<compile_context>
chip_gen: v5e
topology: v5e:2x2
jax: 0.10.0
libtpu: 0.0.40
codegen_flags: <defaults>
</compile_context>

<pallas_src>
import jax
import jax.numpy as jnp
import numpy as np
from jax.experimental import pallas as pl
from jax.experimental.pallas import tpu as pltpu

BN_EPS = 1e-5     # BatchNorm1d default eps
GIN_EPS = 0.0     # GINConv default eps (train_eps=False)
LANE = 128
SUBLANE = 8


def _rup(v, m):
    return ((v + m - 1) // m) * m


def _pad2(a, rows, cols):
    out = jnp.zeros((rows, cols), a.dtype)
    return out.at[: a.shape[0], : a.shape[1]].set(a)


def _vmem_limit_bytes():
    """Per-generation scoped-VMEM limit (v7x: 64 MiB physical, v5e/v6e: 128 MiB)
    with ~20% headroom, instead of a hard-coded constant."""
    try:
        cap = getattr(pltpu.get_tpu_info(), "vmem_capacity_bytes", None)
        if cap:
            return int(cap * 0.8)
    except Exception:
        pass
    return 48 * 1024 * 1024


def _make_kernel(num_nodes, out_channels, Hp, Op, TM, T):
    inv_n = 1.0 / float(num_nodes)
    f32, bf16 = jnp.float32, jnp.bfloat16
    LAST = 2 * T

    def kernel(a_ref, x_ref, p_ref, mrow_ref, w1_ref, wstk_ref, wl_ref,
               vecs_ref, out_ref, z_ref, h_ref):
        s = pl.program_id(0)
        r0 = pl.multiple_of((s % T) * TM, TM)

        # Packed small vectors: one DMA instead of nine; static (free) slices.
        b1, b2 = vecs_ref[0:1, :Hp], vecs_ref[1:2, :Hp]
        g1, be1 = vecs_ref[2:3, :Hp], vecs_ref[3:4, :Hp]
        b3, b4 = vecs_ref[4:5, :Hp], vecs_ref[5:6, :Hp]
        g2, be2 = vecs_ref[6:7, :Hp], vecs_ref[7:8, :Hp]
        bl = vecs_ref[8:9, :Op]

        def mlp_tail(agg, w_a, b_a, w_b, b_b):
            z = jnp.dot(agg.astype(bf16), w_a, preferred_element_type=f32) + b_a
            z = jnp.maximum(z, 0.0)                  # ReLU inside the GIN MLP
            return jnp.dot(z.astype(bf16), w_b, preferred_element_type=f32) + b_b

        def bn_relu(z, gamma, beta):
            # Masked batch stats on the MXU: one fused [z, z*z] matmul with
            # explicit bf16 operands (mrow is 0/1 -> exact), f32 accumulation.
            zc = jnp.concatenate([z, z * z], axis=1).astype(bf16)   # (Np, 2*Hp)
            st = jnp.dot(mrow_ref[...], zc, preferred_element_type=f32)
            mu = st[:, :Hp] * inv_n
            var = jnp.maximum(st[:, Hp:] * inv_n - mu * mu, 0.0)
            inv = jax.lax.rsqrt(var + BN_EPS)
            # gamma/beta are zero in padded lanes -> padded lanes stay exactly 0.
            return jnp.maximum((z - mu) * (inv * gamma) + beta, 0.0)

        # phase 1 (steps [0, T)): layer-1 aggregation + MLP for one A row tile
        @pl.when(s < T)
        def _():
            agg = jnp.dot(a_ref[...], x_ref[...], preferred_element_type=f32)
            z_ref[pl.ds(r0, TM), :] = mlp_tail(agg, w1_ref[...], b1,
                                               wstk_ref[0], b2)

        # barrier at step T: finalize BatchNorm1 + ReLU over all rows -> h (bf16)
        @pl.when(s == T)
        def _():
            h_ref[...] = bn_relu(z_ref[...], g1, be1).astype(bf16)

        # phase 2 (steps [T, 2T)): layer-2 aggregation + MLP for one A row tile
        @pl.when(jnp.logical_and(s >= T, s < LAST))
        def _():
            agg = jnp.dot(a_ref[...], h_ref[...], preferred_element_type=f32)
            z_ref[pl.ds(r0, TM), :] = mlp_tail(agg, wstk_ref[1], b3,
                                               wstk_ref[2], b4)

        # final step: BN2 + ReLU + global_add_pool + Linear + log_softmax
        @pl.when(s == LAST)
        def _():
            h2 = bn_relu(z_ref[...], g2, be2)
            pooled = jnp.dot(p_ref[...], h2.astype(bf16),
                             preferred_element_type=f32)
            logits = jnp.dot(pooled.astype(bf16), wl_ref[...],
                             preferred_element_type=f32) + bl
            # log_softmax over real output lanes only (padded lanes -> -inf).
            col = jax.lax.broadcasted_iota(jnp.int32, logits.shape, 1)
            logits = jnp.where(col < out_channels, logits,
                               jnp.full_like(logits, -1e30))
            m = jnp.max(logits, axis=1, keepdims=True)
            shifted = logits - m
            lse = jnp.log(jnp.sum(jnp.exp(shifted), axis=1, keepdims=True))
            out_ref[...] = shifted - lse

    return kernel


def prepare_graph(edge_index, batch, num_nodes, num_graphs, *, tm=256):
    """Graph-structure operands (A', P, node mask).  Depends only on topology:
    build once, reuse across forward calls.  tm=256 keeps two in-flight A tiles
    + resident activations well under v7x's 64 MiB VMEM (512-1024 is also fine
    on v5e/v6e)."""
    N, G = int(num_nodes), int(num_graphs)
    bf16 = jnp.bfloat16

    Np = _rup(max(N, 1), LANE)
    TM = min(tm, Np)
    Np = _rup(Np, TM)                    # row dim must be a multiple of the tile
    Gp = _rup(max(G, 1), SUBLANE)

    src, dst = edge_index[0], edge_index[1]
    diag = jnp.arange(N, dtype=jnp.int32)
    # Dense adjacency with the GIN self term folded into the diagonal, built
    # directly in bf16 (exact for integer degrees < 256 and eps = 0):
    #   A'[i, j] = #edges j->i ;  A'[i, i] += (1 + eps)
    A = (jnp.zeros((Np, Np), bf16)
         .at[dst, src].add(jnp.asarray(1.0, bf16))
         .at[diag, diag].add(jnp.asarray(1.0 + GIN_EPS, bf16)))

    # Pooling matrix: P[g, n] = 1 iff batch[n] == g (padded nodes match nothing).
    batch_p = jnp.full((Np,), -1, jnp.int32).at[:N].set(batch.astype(jnp.int32))
    P = (batch_p[None, :] ==
         jnp.arange(Gp, dtype=jnp.int32)[:, None]).astype(bf16)

    # Valid-node mask row for the BN statistics matmuls (0/1 -> exact in bf16).
    mrow = (jnp.arange(Np) < N).astype(bf16)[None, :]

    return dict(A=A, P=P, mrow=mrow, N=N, G=G, Np=Np, Gp=Gp, TM=TM, T=Np // TM)


def pack_params(params, in_channels, hidden_channels, out_channels):
    """Pad/cast/pack parameters once: bf16 MXU weights, the three (Hp,Hp) hidden
    weights stacked into one array, and all nine small vectors packed into a
    single (16, lane) f32 slab."""
    f32, bf16 = jnp.float32, jnp.bfloat16
    Cip = _rup(in_channels, LANE)
    Hp = _rup(hidden_channels, LANE)
    Op = _rup(out_channels, LANE)
    Vw = max(Hp, Op)

    w1 = _pad2(params["w1"], Cip, Hp).astype(bf16)
    wstk = jnp.stack([_pad2(params["w2"], Hp, Hp),
                      _pad2(params["w3"], Hp, Hp),
                      _pad2(params["w4"], Hp, Hp)], axis=0).astype(bf16)
    wl = _pad2(params["wl"], Hp, Op).astype(bf16)

    rows = [_pad2(params[k].astype(f32), 1, Vw)
            for k in ("b1", "b2", "g1", "be1", "b3", "b4", "g2", "be2", "bl")]
    rows.append(jnp.zeros((16 - len(rows), Vw), f32))
    vecs = jnp.concatenate(rows, axis=0)             # (16, Vw)

    return dict(w1=w1, wstk=wstk, wl=wl, vecs=vecs,
                Cip=Cip, Hp=Hp, Op=Op, C_out=int(out_channels))


def gin_forward(x, graph, packed):
    f32, bf16 = jnp.float32, jnp.bfloat16
    N, G = graph["N"], graph["G"]
    Np, Gp, TM, T = graph["Np"], graph["Gp"], graph["TM"], graph["T"]
    Cip, Hp, Op = packed["Cip"], packed["Hp"], packed["Op"]
    C_out = packed["C_out"]

    # x enters in bf16: halves its DMA bytes / VMEM residency (the first MXU
    # pass truncated it to bf16 anyway).
    xp = _pad2(x.astype(bf16), Np, Cip)

    grid = (2 * T + 1,)
    last = 2 * T - 1
    in_specs = [
        # A is the only streamed operand: (TM, Np) row tiles, double-buffered by
        # the pipeline (clamped so the final step re-uses the previous tile).
        pl.BlockSpec((TM, Np), lambda s: (jnp.minimum(s, last) % T, 0)),
        # Everything else is loaded once and stays VMEM-resident (constant maps).
        pl.BlockSpec((Np, Cip), lambda s: (0, 0)),
        pl.BlockSpec((Gp, Np), lambda s: (0, 0)),
        pl.BlockSpec((1, Np), lambda s: (0, 0)),
        pl.BlockSpec((Cip, Hp), lambda s: (0, 0)),
        pl.BlockSpec((3, Hp, Hp), lambda s: (0, 0, 0)),
        pl.BlockSpec((Hp, Op), lambda s: (0, 0)),
        pl.BlockSpec(packed["vecs"].shape, lambda s: (0, 0)),
    ]
    out_specs = pl.BlockSpec((Gp, Op), lambda s: (0, 0))
    scratch = [pltpu.VMEM((Np, Hp), f32),    # z: pre-BN activations (full graph)
               pltpu.VMEM((Np, Hp), bf16)]   # h: post BN+ReLU layer-1 output

    args = (graph["A"], xp, graph["P"], graph["mrow"],
            packed["w1"], packed["wstk"], packed["wl"], packed["vecs"])

    flops = (2 * Np * Np * Cip + 2 * Np * Np * Hp            # two aggregations
             + 2 * Np * Cip * Hp + 3 * (2 * Np * Hp * Hp)    # four MLP linears
             + 2 * (2 * Np * 2 * Hp)                         # fused BN stats
             + 2 * Gp * Np * Hp + 2 * Gp * Hp * Op)          # pool + head
    bytes_accessed = (sum(int(a.size) * a.dtype.itemsize for a in args)
                      + Gp * Op * 4)
    transcendentals = Gp * Op + 2 * Hp + Gp

    kernel = _make_kernel(N, C_out, Hp, Op, TM, T)

    out_padded = pl.pallas_call(
        kernel,
        out_shape=jax.ShapeDtypeStruct((Gp, Op), f32),
        grid_spec=pltpu.PrefetchScalarGridSpec(
            num_scalar_prefetch=0,
            grid=grid,
            in_specs=in_specs,
            out_specs=out_specs,
            scratch_shapes=scratch),
        compiler_params=pltpu.CompilerParams(
            dimension_semantics=("arbitrary",),        # BN barrier -> sequential
            vmem_limit_bytes=_vmem_limit_bytes()),
        cost_estimate=pl.CostEstimate(
            flops=int(flops),
            transcendentals=int(transcendentals),
            bytes_accessed=int(bytes_accessed)),
    )(*args)

    # Strip lane / sublane padding outside the kernel.
    return out_padded[:G, :C_out]


def init_params(key, in_channels, hidden_channels, out_channels):
    ks = jax.random.split(key, 10)

    def lin(k, fan_in, fan_out):
        bound = 1.0 / jnp.sqrt(fan_in)
        kw, kb = jax.random.split(k)
        w = jax.random.uniform(kw, (fan_in, fan_out), jnp.float32, -bound, bound)
        b = jax.random.uniform(kb, (1, fan_out), jnp.float32, -bound, bound)
        return w, b

    w1, b1 = lin(ks[0], in_channels, hidden_channels)
    w2, b2 = lin(ks[1], hidden_channels, hidden_channels)
    w3, b3 = lin(ks[2], hidden_channels, hidden_channels)
    w4, b4 = lin(ks[3], hidden_channels, hidden_channels)
    wl, bl = lin(ks[4], hidden_channels, out_channels)

    ones = jnp.ones((1, hidden_channels), jnp.float32)
    zeros = jnp.zeros((1, hidden_channels), jnp.float32)

    return dict(
        w1=w1, b1=b1, w2=w2, b2=b2, g1=ones, be1=zeros,
        w3=w3, b3=b3, w4=w4, b4=b4, g2=ones, be2=zeros,
        wl=wl, bl=bl,
    )


def gin_reference(x, edge_index, batch, params, num_graphs):
    """Plain-JAX reference mirroring the kernel's bf16 MXU / bf16 BN-stats path."""
    f32, bf16 = jnp.float32, jnp.bfloat16
    N = x.shape[0]
    src, dst = edge_index[0], edge_index[1]
    A = (jnp.zeros((N, N), f32).at[dst, src].add(1.0)
         + (1.0 + GIN_EPS) * jnp.eye(N, dtype=f32))
    P = (batch[None, :] ==
         jnp.arange(num_graphs, dtype=jnp.int32)[:, None]).astype(f32)

    def mm(a, b):
        return jnp.dot(a.astype(bf16), b.astype(bf16), preferred_element_type=f32)

    def layer(h, wa, ba, wb, bb, g, be):
        z = mm(A, h)
        z = jnp.maximum(mm(z, wa) + ba, 0.0)
        z = mm(z, wb) + bb
        zb = z.astype(bf16).astype(f32)
        z2b = (z * z).astype(bf16).astype(f32)
        mu = jnp.mean(zb, axis=0, keepdims=True)
        var = jnp.maximum(jnp.mean(z2b, axis=0, keepdims=True) - mu * mu, 0.0)
        z = (z - mu) * jax.lax.rsqrt(var + BN_EPS) * g + be
        return jnp.maximum(z, 0.0)

    h = layer(x, params["w1"], params["b1"], params["w2"], params["b2"],
              params["g1"], params["be1"])
    h = layer(h, params["w3"], params["b3"], params["w4"], params["b4"],
              params["g2"], params["be2"])
    pooled = mm(P, h)
    logits = mm(pooled, params["wl"]) + params["bl"]
    return jax.nn.log_softmax(logits, axis=1)


if __name__ == "__main__":
    key = jax.random.PRNGKey(0)
    kx, kp = jax.random.split(key)

    in_channels, hidden_channels, out_channels = 8, 32, 4
    num_graphs = 2
    nodes_per_graph = 8
    N = num_graphs * nodes_per_graph

    # Node features
    x = jax.random.normal(kx, (N, in_channels), jnp.float32)

    # Two ring graphs (bidirectional edges), nodes 0..7 and 8..15
    srcs, dsts = [], []
    for g in range(num_graphs):
        base = g * nodes_per_graph
        for i in range(nodes_per_graph):
            a = base + i
            b = base + (i + 1) % nodes_per_graph
            srcs += [a, b]
            dsts += [b, a]
    edge_index = jnp.array([srcs, dsts], dtype=jnp.int32)   # (2, E)
    batch = jnp.repeat(jnp.arange(num_graphs, dtype=jnp.int32), nodes_per_graph)

    params = init_params(kp, in_channels, hidden_channels, out_channels)

    # Structure-dependent operands and packed/padded params are built ONCE and
    # reused across forward calls (they are off the per-call critical path).
    graph = prepare_graph(edge_index, batch, N, num_graphs)
    packed = pack_params(params, in_channels, hidden_channels, out_channels)

    out = gin_forward(x, graph, packed)
    out = jax.block_until_ready(out)
    assert out.shape == (num_graphs, out_channels)

    ref = gin_reference(x, edge_index, batch, params, num_graphs)
    np.testing.assert_allclose(np.asarray(out), np.asarray(ref),
                               atol=2e-2, rtol=2e-2)
    print("KERNEL_OK")
</pallas_src>

<mosaic_0001>
module attributes {stable_mosaic.version = 11 : i64} {
  func.func @kernel(%arg0: i32, %arg1: memref<128x128xbf16, #tpu.memory_space<vmem>>, %arg2: memref<128x128xbf16, #tpu.memory_space<vmem>>, %arg3: memref<8x128xbf16, #tpu.memory_space<vmem>>, %arg4: memref<1x128xbf16, #tpu.memory_space<vmem>>, %arg5: memref<128x128xbf16, #tpu.memory_space<vmem>>, %arg6: memref<3x128x128xbf16, #tpu.memory_space<vmem>>, %arg7: memref<128x128xbf16, #tpu.memory_space<vmem>>, %arg8: memref<16x128xf32, #tpu.memory_space<vmem>>, %arg9: memref<8x128xf32, #tpu.memory_space<vmem>>, %arg10: memref<128x128xf32, #tpu.memory_space<vmem>>, %arg11: memref<128x128xbf16, #tpu.memory_space<vmem>>) attributes {dimension_semantics = [#tpu.dimension_semantics<arbitrary>], iteration_bounds = array<i64: 3>, scalar_prefetch = 0 : i64, scratch_operands = 2 : i64, tpu.core_type = #tpu.core_type<tc>, window_params = [{transform_indices = @transform_0, window_bounds = array<i64: 128, 128>}, {pipeline_mode = #tpu.pipeline_mode<synchronous>, transform_indices = @transform_1, window_bounds = array<i64: 128, 128>}, {pipeline_mode = #tpu.pipeline_mode<synchronous>, transform_indices = @transform_2, window_bounds = array<i64: 8, 128>}, {pipeline_mode = #tpu.pipeline_mode<synchronous>, transform_indices = @transform_3, window_bounds = array<i64: 1, 128>}, {pipeline_mode = #tpu.pipeline_mode<synchronous>, transform_indices = @transform_4, window_bounds = array<i64: 128, 128>}, {pipeline_mode = #tpu.pipeline_mode<synchronous>, transform_indices = @transform_5, window_bounds = array<i64: 3, 128, 128>}, {pipeline_mode = #tpu.pipeline_mode<synchronous>, transform_indices = @transform_6, window_bounds = array<i64: 128, 128>}, {pipeline_mode = #tpu.pipeline_mode<synchronous>, transform_indices = @transform_7, window_bounds = array<i64: 16, 128>}, {pipeline_mode = #tpu.pipeline_mode<synchronous>, transform_indices = @transform_8, window_bounds = array<i64: 8, 128>}]} {
    %c1_i32 = arith.constant 1 : i32
    %c0_i32 = arith.constant 0 : i32
    %0 = arith.cmpi eq, %c1_i32, %c0_i32 : i32
    %c1_i32_0 = arith.constant 1 : i32
    %1 = arith.select %0, %c1_i32_0, %c1_i32 : i32
    %2 = arith.remsi %arg0, %1 : i32
    %c0_i32_1 = arith.constant 0 : i32
    %3 = arith.cmpi ne, %2, %c0_i32_1 : i32
    %c0_i32_2 = arith.constant 0 : i32
    %4 = arith.cmpi slt, %2, %c0_i32_2 : i32
    %c0_i32_3 = arith.constant 0 : i32
    %5 = arith.cmpi slt, %1, %c0_i32_3 : i32
    %6 = arith.xori %4, %5 : i1
    %7 = arith.andi %6, %3 : i1
    %8 = arith.addi %2, %1 : i32
    %9 = arith.select %7, %8, %2 : i32
    %c128_i32 = arith.constant 128 : i32
    %10 = arith.muli %9, %c128_i32 : i32
    %11 = tpu.assume_multiple %10, 128 : i32
    %c0 = arith.constant 0 : index
    %c0_4 = arith.constant 0 : index
    %12 = vector.load %arg8[%c0, %c0_4] : memref<16x128xf32, #tpu.memory_space<vmem>>, vector<1x128xf32>
    %c1 = arith.constant 1 : index
    %c0_5 = arith.constant 0 : index
    %13 = vector.load %arg8[%c1, %c0_5] : memref<16x128xf32, #tpu.memory_space<vmem>>, vector<1x128xf32>
    %c2 = arith.constant 2 : index
    %c0_6 = arith.constant 0 : index
    %14 = vector.load %arg8[%c2, %c0_6] : memref<16x128xf32, #tpu.memory_space<vmem>>, vector<1x128xf32>
    %c3 = arith.constant 3 : index
    %c0_7 = arith.constant 0 : index
    %15 = vector.load %arg8[%c3, %c0_7] : memref<16x128xf32, #tpu.memory_space<vmem>>, vector<1x128xf32>
    %c4 = arith.constant 4 : index
    %c0_8 = arith.constant 0 : index
    %16 = vector.load %arg8[%c4, %c0_8] : memref<16x128xf32, #tpu.memory_space<vmem>>, vector<1x128xf32>
    %c5 = arith.constant 5 : index
    %c0_9 = arith.constant 0 : index
    %17 = vector.load %arg8[%c5, %c0_9] : memref<16x128xf32, #tpu.memory_space<vmem>>, vector<1x128xf32>
    %c6 = arith.constant 6 : index
    %c0_10 = arith.constant 0 : index
    %18 = vector.load %arg8[%c6, %c0_10] : memref<16x128xf32, #tpu.memory_space<vmem>>, vector<1x128xf32>
    %c7 = arith.constant 7 : index
    %c0_11 = arith.constant 0 : index
    %19 = vector.load %arg8[%c7, %c0_11] : memref<16x128xf32, #tpu.memory_space<vmem>>, vector<1x128xf32>
    %c8 = arith.constant 8 : index
    %c0_12 = arith.constant 0 : index
    %20 = vector.load %arg8[%c8, %c0_12] : memref<16x128xf32, #tpu.memory_space<vmem>>, vector<1x128xf32>
    %c1_i32_13 = arith.constant 1 : i32
    %21 = arith.cmpi slt, %arg0, %c1_i32_13 : i32
    %22 = arith.extui %21 : i1 to i32
    %c0_i32_14 = arith.constant 0 : i32
    %23 = arith.cmpi ne, %22, %c0_i32_14 : i32
    scf.if %23 {
      %c0_21 = arith.constant 0 : index
      %c0_22 = arith.constant 0 : index
      %35 = vector.load %arg1[%c0_21, %c0_22] : memref<128x128xbf16, #tpu.memory_space<vmem>>, vector<128x128xbf16>
      %c0_23 = arith.constant 0 : index
      %c0_24 = arith.constant 0 : index
      %36 = vector.load %arg2[%c0_23, %c0_24] : memref<128x128xbf16, #tpu.memory_space<vmem>>, vector<128x128xbf16>
      %cst = arith.constant dense<0.000000e+00> : vector<128x128xf32>
      %37 = tpu.matmul %35, %36, %cst {dimension_numbers = #tpu.dot_dimension_numbers<[1], [0], [0], [1], [0, 0, 1, 1], [], []>} : vector<128x128xbf16>, vector<128x128xbf16>, vector<128x128xf32> -> vector<128x128xf32>
      %c0_25 = arith.constant 0 : index
      %c0_26 = arith.constant 0 : index
      %38 = vector.load %arg5[%c0_25, %c0_26] : memref<128x128xbf16, #tpu.memory_space<vmem>>, vector<128x128xbf16>
      %c0_27 = arith.constant 0 : index
      %c0_28 = arith.constant 0 : index
      %c0_29 = arith.constant 0 : index
      %39 = vector.load %arg6[%c0_27, %c0_28, %c0_29] : memref<3x128x128xbf16, #tpu.memory_space<vmem>>, vector<1x128x128xbf16>
      %40 = vector.shape_cast %39 : vector<1x128x128xbf16> to vector<128x128xbf16>
      %41 = arith.truncf %37 : vector<128x128xf32> to vector<128x128xbf16>
      %cst_30 = arith.constant dense<0.000000e+00> : vector<128x128xf32>
      %42 = tpu.matmul %41, %38, %cst_30 {dimension_numbers = #tpu.dot_dimension_numbers<[1], [0], [0], [1], [0, 0, 1, 1], [], []>} : vector<128x128xbf16>, vector<128x128xbf16>, vector<128x128xf32> -> vector<128x128xf32>
      %43 = vector.broadcast %12 : vector<1x128xf32> to vector<128x128xf32>
      %44 = arith.addf %42, %43 : vector<128x128xf32>
      %cst_31 = arith.constant 0.000000e+00 : f32
      %45 = vector.broadcast %cst_31 : f32 to vector<128x128xf32>
      %46 = arith.maximumf %44, %45 : vector<128x128xf32>
      %47 = arith.truncf %46 : vector<128x128xf32> to vector<128x128xbf16>
      %cst_32 = arith.constant dense<0.000000e+00> : vector<128x128xf32>
      %48 = tpu.matmul %47, %40, %cst_32 {dimension_numbers = #tpu.dot_dimension_numbers<[1], [0], [0], [1], [0, 0, 1, 1], [], []>} : vector<128x128xbf16>, vector<128x128xbf16>, vector<128x128xf32> -> vector<128x128xf32>
      %49 = vector.broadcast %13 : vector<1x128xf32> to vector<128x128xf32>
      %50 = arith.addf %48, %49 : vector<128x128xf32>
      %51 = arith.index_cast %11 : i32 to index
      %c0_33 = arith.constant 0 : index
      %52 = vector.load %arg10[%51, %c0_33] : memref<128x128xf32, #tpu.memory_space<vmem>>, vector<128x128xf32>
      tpu.vector_store %arg10[%51, %c0_33], %50 {strides = array<i32>} : memref<128x128xf32, #tpu.memory_space<vmem>>, vector<128x128xf32>,
    } else {
    }
    %c1_i32_15 = arith.constant 1 : i32
    %24 = arith.cmpi eq, %arg0, %c1_i32_15 : i32
    %25 = arith.extui %24 : i1 to i32
    %c0_i32_16 = arith.constant 0 : i32
    %26 = arith.cmpi ne, %25, %c0_i32_16 : i32
    scf.if %26 {
      %c0_21 = arith.constant 0 : index
      %c0_22 = arith.constant 0 : index
      %35 = vector.load %arg10[%c0_21, %c0_22] : memref<128x128xf32, #tpu.memory_space<vmem>>, vector<128x128xf32>
      %36 = arith.mulf %35, %35 : vector<128x128xf32>
      %37 = tpu.concatenate %35, %36 in 1 : vector<128x128xf32>, vector<128x128xf32> -> vector<128x256xf32>
      %38 = arith.truncf %37 : vector<128x256xf32> to vector<128x256xbf16>
      %c0_23 = arith.constant 0 : index
      %c0_24 = arith.constant 0 : index
      %39 = vector.load %arg4[%c0_23, %c0_24] : memref<1x128xbf16, #tpu.memory_space<vmem>>, vector<1x128xbf16>
      %cst = arith.constant dense<0.000000e+00> : vector<1x256xf32>
      %40 = tpu.matmul %39, %38, %cst {dimension_numbers = #tpu.dot_dimension_numbers<[1], [0], [0], [1], [0, 0, 1, 1], [], []>} : vector<1x128xbf16>, vector<128x256xbf16>, vector<1x256xf32> -> vector<1x256xf32>
      %41 = vector.extract_strided_slice %40 {offsets = [0, 0], sizes = [1, 128], strides = [1, 1]} : vector<1x256xf32> to vector<1x128xf32>
      %cst_25 = arith.constant 6.250000e-02 : f32
      %42 = vector.broadcast %cst_25 : f32 to vector<1x128xf32>
      %43 = arith.mulf %41, %42 : vector<1x128xf32>
      %44 = vector.extract_strided_slice %40 {offsets = [0, 128], sizes = [1, 128], strides = [1, 1]} : vector<1x256xf32> to vector<1x128xf32>
      %cst_26 = arith.constant 6.250000e-02 : f32
      %45 = vector.broadcast %cst_26 : f32 to vector<1x128xf32>
      %46 = arith.mulf %44, %45 : vector<1x128xf32>
      %47 = arith.mulf %43, %43 : vector<1x128xf32>
      %48 = arith.subf %46, %47 : vector<1x128xf32>
      %cst_27 = arith.constant 0.000000e+00 : f32
      %49 = vector.broadcast %cst_27 : f32 to vector<1x128xf32>
      %50 = arith.maximumf %48, %49 : vector<1x128xf32>
      %cst_28 = arith.constant 9.99999974E-6 : f32
      %51 = vector.broadcast %cst_28 : f32 to vector<1x128xf32>
      %52 = arith.addf %50, %51 : vector<1x128xf32>
      %53 = math.rsqrt %52 : vector<1x128xf32>
      %54 = vector.broadcast %43 : vector<1x128xf32> to vector<128x128xf32>
      %55 = arith.subf %35, %54 : vector<128x128xf32>
      %56 = arith.mulf %53, %14 : vector<1x128xf32>
      %57 = vector.broadcast %56 : vector<1x128xf32> to vector<128x128xf32>
      %58 = arith.mulf %55, %57 : vector<128x128xf32>
      %59 = vector.broadcast %15 : vector<1x128xf32> to vector<128x128xf32>
      %60 = arith.addf %58, %59 : vector<128x128xf32>
      %cst_29 = arith.constant 0.000000e+00 : f32
      %61 = vector.broadcast %cst_29 : f32 to vector<128x128xf32>
      %62 = arith.maximumf %60, %61 : vector<128x128xf32>
      %63 = arith.truncf %62 : vector<128x128xf32> to vector<128x128xbf16>
      %c0_30 = arith.constant 0 : index
      %c0_31 = arith.constant 0 : index
      %64 = vector.load %arg11[%c0_30, %c0_31] : memref<128x128xbf16, #tpu.memory_space<vmem>>, vector<128x128xbf16>
      tpu.vector_store %arg11[%c0_30, %c0_31], %63 {strides = array<i32>} : memref<128x128xbf16, #tpu.memory_space<vmem>>, vector<128x128xbf16>,
    } else {
    }
    %c1_i32_17 = arith.constant 1 : i32
    %27 = arith.cmpi sge, %arg0, %c1_i32_17 : i32
    %c2_i32 = arith.constant 2 : i32
    %28 = arith.cmpi slt, %arg0, %c2_i32 : i32
    %29 = arith.andi %27, %28 : i1
    %30 = arith.extui %29 : i1 to i32
    %c0_i32_18 = arith.constant 0 : i32
    %31 = arith.cmpi ne, %30, %c0_i32_18 : i32
    scf.if %31 {
      %c0_21 = arith.constant 0 : index
      %c0_22 = arith.constant 0 : index
      %35 = vector.load %arg1[%c0_21, %c0_22] : memref<128x128xbf16, #tpu.memory_space<vmem>>, vector<128x128xbf16>
      %c0_23 = arith.constant 0 : index
      %c0_24 = arith.constant 0 : index
      %36 = vector.load %arg11[%c0_23, %c0_24] : memref<128x128xbf16, #tpu.memory_space<vmem>>, vector<128x128xbf16>
      %cst = arith.constant dense<0.000000e+00> : vector<128x128xf32>
      %37 = tpu.matmul %35, %36, %cst {dimension_numbers = #tpu.dot_dimension_numbers<[1], [0], [0], [1], [0, 0, 1, 1], [], []>} : vector<128x128xbf16>, vector<128x128xbf16>, vector<128x128xf32> -> vector<128x128xf32>
      %c1_25 = arith.constant 1 : index
      %c0_26 = arith.constant 0 : index
      %c0_27 = arith.constant 0 : index
      %38 = vector.load %arg6[%c1_25, %c0_26, %c0_27] : memref<3x128x128xbf16, #tpu.memory_space<vmem>>, vector<1x128x128xbf16>
      %39 = vector.shape_cast %38 : vector<1x128x128xbf16> to vector<128x128xbf16>
      %c2_28 = arith.constant 2 : index
      %c0_29 = arith.constant 0 : index
      %c0_30 = arith.constant 0 : index
      %40 = vector.load %arg6[%c2_28, %c0_29, %c0_30] : memref<3x128x128xbf16, #tpu.memory_space<vmem>>, vector<1x128x128xbf16>
      %41 = vector.shape_cast %40 : vector<1x128x128xbf16> to vector<128x128xbf16>
      %42 = arith.truncf %37 : vector<128x128xf32> to vector<128x128xbf16>
      %cst_31 = arith.constant dense<0.000000e+00> : vector<128x128xf32>
      %43 = tpu.matmul %42, %39, %cst_31 {dimension_numbers = #tpu.dot_dimension_numbers<[1], [0], [0], [1], [0, 0, 1, 1], [], []>} : vector<128x128xbf16>, vector<128x128xbf16>, vector<128x128xf32> -> vector<128x128xf32>
      %44 = vector.broadcast %16 : vector<1x128xf32> to vector<128x128xf32>
      %45 = arith.addf %43, %44 : vector<128x128xf32>
      %cst_32 = arith.constant 0.000000e+00 : f32
      %46 = vector.broadcast %cst_32 : f32 to vector<128x128xf32>
      %47 = arith.maximumf %45, %46 : vector<128x128xf32>
      %48 = arith.truncf %47 : vector<128x128xf32> to vector<128x128xbf16>
      %cst_33 = arith.constant dense<0.000000e+00> : vector<128x128xf32>
      %49 = tpu.matmul %48, %41, %cst_33 {dimension_numbers = #tpu.dot_dimension_numbers<[1], [0], [0], [1], [0, 0, 1, 1], [], []>} : vector<128x128xbf16>, vector<128x128xbf16>, vector<128x128xf32> -> vector<128x128xf32>
      %50 = vector.broadcast %17 : vector<1x128xf32> to vector<128x128xf32>
      %51 = arith.addf %49, %50 : vector<128x128xf32>
      %52 = arith.index_cast %11 : i32 to index
      %c0_34 = arith.constant 0 : index
      %53 = vector.load %arg10[%52, %c0_34] : memref<128x128xf32, #tpu.memory_space<vmem>>, vector<128x128xf32>
      tpu.vector_store %arg10[%52, %c0_34], %51 {strides = array<i32>} : memref<128x128xf32, #tpu.memory_space<vmem>>, vector<128x128xf32>,
    } else {
    }
    %c2_i32_19 = arith.constant 2 : i32
    %32 = arith.cmpi eq, %arg0, %c2_i32_19 : i32
    %33 = arith.extui %32 : i1 to i32
    %c0_i32_20 = arith.constant 0 : i32
    %34 = arith.cmpi ne, %33, %c0_i32_20 : i32
    scf.if %34 {
      %c0_21 = arith.constant 0 : index
      %c0_22 = arith.constant 0 : index
      %35 = vector.load %arg10[%c0_21, %c0_22] : memref<128x128xf32, #tpu.memory_space<vmem>>, vector<128x128xf32>
      %36 = arith.mulf %35, %35 : vector<128x128xf32>
      %37 = tpu.concatenate %35, %36 in 1 : vector<128x128xf32>, vector<128x128xf32> -> vector<128x256xf32>
      %38 = arith.truncf %37 : vector<128x256xf32> to vector<128x256xbf16>
      %c0_23 = arith.constant 0 : index
      %c0_24 = arith.constant 0 : index
      %39 = vector.load %arg4[%c0_23, %c0_24] : memref<1x128xbf16, #tpu.memory_space<vmem>>, vector<1x128xbf16>
      %cst = arith.constant dense<0.000000e+00> : vector<1x256xf32>
      %40 = tpu.matmul %39, %38, %cst {dimension_numbers = #tpu.dot_dimension_numbers<[1], [0], [0], [1], [0, 0, 1, 1], [], []>} : vector<1x128xbf16>, vector<128x256xbf16>, vector<1x256xf32> -> vector<1x256xf32>
      %41 = vector.extract_strided_slice %40 {offsets = [0, 0], sizes = [1, 128], strides = [1, 1]} : vector<1x256xf32> to vector<1x128xf32>
      %cst_25 = arith.constant 6.250000e-02 : f32
      %42 = vector.broadcast %cst_25 : f32 to vector<1x128xf32>
      %43 = arith.mulf %41, %42 : vector<1x128xf32>
      %44 = vector.extract_strided_slice %40 {offsets = [0, 128], sizes = [1, 128], strides = [1, 1]} : vector<1x256xf32> to vector<1x128xf32>
      %cst_26 = arith.constant 6.250000e-02 : f32
      %45 = vector.broadcast %cst_26 : f32 to vector<1x128xf32>
      %46 = arith.mulf %44, %45 : vector<1x128xf32>
      %47 = arith.mulf %43, %43 : vector<1x128xf32>
      %48 = arith.subf %46, %47 : vector<1x128xf32>
      %cst_27 = arith.constant 0.000000e+00 : f32
      %49 = vector.broadcast %cst_27 : f32 to vector<1x128xf32>
      %50 = arith.maximumf %48, %49 : vector<1x128xf32>
      %cst_28 = arith.constant 9.99999974E-6 : f32
      %51 = vector.broadcast %cst_28 : f32 to vector<1x128xf32>
      %52 = arith.addf %50, %51 : vector<1x128xf32>
      %53 = math.rsqrt %52 : vector<1x128xf32>
      %54 = vector.broadcast %43 : vector<1x128xf32> to vector<128x128xf32>
      %55 = arith.subf %35, %54 : vector<128x128xf32>
      %56 = arith.mulf %53, %18 : vector<1x128xf32>
      %57 = vector.broadcast %56 : vector<1x128xf32> to vector<128x128xf32>
      %58 = arith.mulf %55, %57 : vector<128x128xf32>
      %59 = vector.broadcast %19 : vector<1x128xf32> to vector<128x128xf32>
      %60 = arith.addf %58, %59 : vector<128x128xf32>
      %cst_29 = arith.constant 0.000000e+00 : f32
      %61 = vector.broadcast %cst_29 : f32 to vector<128x128xf32>
      %62 = arith.maximumf %60, %61 : vector<128x128xf32>
      %c0_30 = arith.constant 0 : index
      %c0_31 = arith.constant 0 : index
      %63 = vector.load %arg3[%c0_30, %c0_31] : memref<8x128xbf16, #tpu.memory_space<vmem>>, vector<8x128xbf16>
      %64 = arith.truncf %62 : vector<128x128xf32> to vector<128x128xbf16>
      %cst_32 = arith.constant dense<0.000000e+00> : vector<8x128xf32>
      %65 = tpu.matmul %63, %64, %cst_32 {dimension_numbers = #tpu.dot_dimension_numbers<[1], [0], [0], [1], [0, 0, 1, 1], [], []>} : vector<8x128xbf16>, vector<128x128xbf16>, vector<8x128xf32> -> vector<8x128xf32>
      %66 = arith.truncf %65 : vector<8x128xf32> to vector<8x128xbf16>
      %c0_33 = arith.constant 0 : index
      %c0_34 = arith.constant 0 : index
      %67 = vector.load %arg7[%c0_33, %c0_34] : memref<128x128xbf16, #tpu.memory_space<vmem>>, vector<128x128xbf16>
      %cst_35 = arith.constant dense<0.000000e+00> : vector<8x128xf32>
      %68 = tpu.matmul %66, %67, %cst_35 {dimension_numbers = #tpu.dot_dimension_numbers<[1], [0], [0], [1], [0, 0, 1, 1], [], []>} : vector<8x128xbf16>, vector<128x128xbf16>, vector<8x128xf32> -> vector<8x128xf32>
      %69 = vector.broadcast %20 : vector<1x128xf32> to vector<8x128xf32>
      %70 = arith.addf %68, %69 : vector<8x128xf32>
      %71 = tpu.iota {dimensions = array<i32: 1>} : vector<8x128xi32>
      %c4_i32 = arith.constant 4 : i32
      %72 = vector.broadcast %c4_i32 : i32 to vector<8x128xi32>
      %73 = arith.cmpi slt, %71, %72 : vector<8x128xi32>
      %cst_36 = arith.constant -1.000000e+30 : f32
      %74 = vector.broadcast %cst_36 : f32 to vector<8x128xf32>
      %75 = arith.select %73, %70, %74 : vector<8x128xi1>, vector<8x128xf32>
      %cst_37 = arith.constant dense<0xFF800000> : vector<8xf32>
      %76 = vector.multi_reduction <maximumf>, %75, %cst_37 [1] : vector<8x128xf32> to vector<8xf32>
      %77 = vector.shape_cast %76 : vector<8xf32> to vector<8x1xf32>
      %78 = vector.broadcast %77 : vector<8x1xf32> to vector<8x128xf32>
      %79 = arith.subf %75, %78 : vector<8x128xf32>
      %80 = math.exp %79 : vector<8x128xf32>
      %cst_38 = arith.constant dense<0.000000e+00> : vector<8xf32>
      %81 = vector.multi_reduction <add>, %80, %cst_38 [1] : vector<8x128xf32> to vector<8xf32>
      %82 = vector.shape_cast %81 : vector<8xf32> to vector<8x1xf32>
      %83 = math.log %82 : vector<8x1xf32>
      %84 = vector.broadcast %83 : vector<8x1xf32> to vector<8x128xf32>
      %85 = arith.subf %79, %84 : vector<8x128xf32>
      %c0_39 = arith.constant 0 : index
      %c0_40 = arith.constant 0 : index
      %86 = vector.load %arg9[%c0_39, %c0_40] : memref<8x128xf32, #tpu.memory_space<vmem>>, vector<8x128xf32>
      tpu.vector_store %arg9[%c0_39, %c0_40], %85 {strides = array<i32>} : memref<8x128xf32, #tpu.memory_space<vmem>>, vector<8x128xf32>,
    } else {
    }
    return
  }
  func.func @transform_0(%arg0: i32) -> (i32, i32) {
    %c1_i32 = arith.constant 1 : i32
    %0 = arith.minsi %arg0, %c1_i32 : i32
    %c1_i32_0 = arith.constant 1 : i32
    %c0_i32 = arith.constant 0 : i32
    %1 = arith.cmpi eq, %c1_i32_0, %c0_i32 : i32
    %c1_i32_1 = arith.constant 1 : i32
    %2 = arith.select %1, %c1_i32_1, %c1_i32_0 : i32
    %3 = arith.remsi %0, %2 : i32
    %c0_i32_2 = arith.constant 0 : i32
    %4 = arith.cmpi ne, %3, %c0_i32_2 : i32
    %c0_i32_3 = arith.constant 0 : i32
    %5 = arith.cmpi slt, %3, %c0_i32_3 : i32
    %c0_i32_4 = arith.constant 0 : i32
    %6 = arith.cmpi slt, %2, %c0_i32_4 : i32
    %7 = arith.xori %5, %6 : i1
    %8 = arith.andi %7, %4 : i1
    %9 = arith.addi %3, %2 : i32
    %10 = arith.select %8, %9, %3 : i32
    %c0_i32_5 = arith.constant 0 : i32
    %c0_i32_6 = arith.constant 0 : i32
    return %10, %c0_i32_5 : i32, i32
  }
  func.func @transform_1(%arg0: i32) -> (i32, i32) {
    %c0_i32 = arith.constant 0 : i32
    %c0_i32_0 = arith.constant 0 : i32
    %c0_i32_1 = arith.constant 0 : i32
    return %c0_i32, %c0_i32_0 : i32, i32
  }
  func.func @transform_2(%arg0: i32) -> (i32, i32) {
    %c0_i32 = arith.constant 0 : i32
    %c0_i32_0 = arith.constant 0 : i32
    %c0_i32_1 = arith.constant 0 : i32
    return %c0_i32, %c0_i32_0 : i32, i32
  }
  func.func @transform_3(%arg0: i32) -> (i32, i32) {
    %c0_i32 = arith.constant 0 : i32
    %c0_i32_0 = arith.constant 0 : i32
    %c0_i32_1 = arith.constant 0 : i32
    return %c0_i32, %c0_i32_0 : i32, i32
  }
  func.func @transform_4(%arg0: i32) -> (i32, i32) {
    %c0_i32 = arith.constant 0 : i32
    %c0_i32_0 = arith.constant 0 : i32
    %c0_i32_1 = arith.constant 0 : i32
    return %c0_i32, %c0_i32_0 : i32, i32
  }
  func.func @transform_5(%arg0: i32) -> (i32, i32, i32) {
    %c0_i32 = arith.constant 0 : i32
    %c0_i32_0 = arith.constant 0 : i32
    %c0_i32_1 = arith.constant 0 : i32
    %c0_i32_2 = arith.constant 0 : i32
    return %c0_i32, %c0_i32_0, %c0_i32_1 : i32, i32, i32
  }
  func.func @transform_6(%arg0: i32) -> (i32, i32) {
    %c0_i32 = arith.constant 0 : i32
    %c0_i32_0 = arith.constant 0 : i32
    %c0_i32_1 = arith.constant 0 : i32
    return %c0_i32, %c0_i32_0 : i32, i32
  }
  func.func @transform_7(%arg0: i32) -> (i32, i32) {
    %c0_i32 = arith.constant 0 : i32
    %c0_i32_0 = arith.constant 0 : i32
    %c0_i32_1 = arith.constant 0 : i32
    return %c0_i32, %c0_i32_0 : i32, i32
  }
  func.func @transform_8(%arg0: i32) -> (i32, i32) {
    %c0_i32 = arith.constant 0 : i32
    %c0_i32_0 = arith.constant 0 : i32
    %c0_i32_1 = arith.constant 0 : i32
    return %c0_i32, %c0_i32_0 : i32, i32
  }
}

</mosaic_0001>

<bundles_post_ra>
// kernel: tpu_custom_call.1
= control target key start
LH: loop header
LB: loop body
LE: loop exit
PB: predicated region body
PF: predicated region fallthrough
CT: control target
= control target key end

     0   :  { %13 = vsyncpa [#allocation5], 0  ;;  %s3165_s0 = inlined_call_operand.hbm [shape: bf16[128,128], index: 0, kind: input, shape index: {}]   ;;  %s3166_s1 = inlined_call_operand.hbm [shape: bf16[128,128], index: 1, kind: input, shape index: {}]   ;;  %s3167_s2 = inlined_call_operand.hbm [shape: bf16[8,128], index: 2, kind: input, shape index: {}]   ;;  %s3168_s3 = inlined_call_operand.vmem [shape: bf16[1,128], index: 3, kind: input, shape index: {}]   ;;  %s3169_s4 = inlined_call_operand.hbm [shape: bf16[128,128], index: 4, kind: input, shape index: {}]   ;;  %s3170_s5 = inlined_call_operand.hbm [shape: bf16[3,128,128], index: 5, kind: input, shape index: {}]   ;;  %s3171_s6 = inlined_call_operand.hbm [shape: bf16[128,128], index: 6, kind: input, shape index: {}]   ;;  %s3172_s7 = inlined_call_operand.hbm [shape: f32[16,128], index: 7, kind: input, shape index: {}]   ;;  %s3173_s8 = inlined_call_operand.hbm [shape: f32[8,128], index: 8, kind: output, shape index: {}]  }
   0x1   :  { %14 = vsyncpa [#allocation8], 0 }
   0x2   :  { %15 = vsyncpa [#allocation11], 0 }
   0x3   :  { %16 = vsyncpa [#allocation14], 0 }
   0x4   :  { %17 = vsyncpa [#allocation6], 0  ;;  %s2792_s27 = smov 0  }
   0x5 LB: > { %s2798_s28 = sadd.s32 4294967295, %s2733_s27   ;;  %p1893_p0 = scmp.ge.s32.totalorder %s2733_s27, 1  ;;  %s2733_s27 = sphi %s2792_s27, %s23_s27  }
   0x6   : > { %p217_p1 = scmp.lt.s32.totalorder %s2733_s27, 4  ;;  %p2425_p2 = scmp.eq.s32.totalorder %s2798_s28, 0 }
   0x7   : > { %s242_s9 = sshll.u32 %s3166_s1, 4  ;;  %s271_s13 = sshll.u32 %s3169_s4, 4  ;;  %s243_s9 = int_to_ptr.hbm [resolvable:$true] %s242_s9  ;;  %s272_s13 = int_to_ptr.hbm [resolvable:$true] %s271_s13 }
   0x8   : > { %p2806_p3 = pnand %p1893_p0, %p217_p1  ;;  %s2735_s14 = smov [#allocation7]  }
   0x9   : > { %s244_s15 = sshll.u32 %s2735_s14, 4  ;;  %s2736_s17 = smov [#allocation10]   ;;  %s245_s15 = int_to_ptr.vmem [resolvable:$true] %s244_s15 }
   0xa   : > { %p2403_p4 = pneg %p2806_p3  ;;  %s273_s18 = sshll.u32 %s2736_s17, 4  ;;  %s274_s18 = int_to_ptr.vmem [resolvable:$true] %s273_s18 }
   0xb   : > { %s299_s21 = sshll.u32 %s3171_s6, 4  ;;  %s2737_s22 = smov 64   ;;  %s300_s21 = int_to_ptr.hbm [resolvable:$true] %s299_s21 }
   0xc   : > { %p2817_p5 = pnand %p2425_p2, %p2403_p4  ;;  %s2738_s23 = smov 4  }
   0xd   : > { %s2739_s24 = smov [#allocation13]   ;;  %s228_s30 = sshll.u32 %s3165_s0, 4  ;;  %s229_s30 = int_to_ptr.hbm [resolvable:$true] %s228_s30 }
   0xe   : > { %2409 = dma.hbm_to_vmem [thread:$0]  (!%p2817_p5), %s243_s9, 1024, %s245_s15, [#allocation8], %s2737_s22, %s2737_s22, %s2738_s23  }
   0xf   : > { %2415 = dma.hbm_to_vmem [thread:$0]  (!%p2817_p5), %s272_s13, 1024, %s274_s18, [#allocation11], %s2737_s22, %s2737_s22, %s2738_s23  }
  0x10   : > { %s301_s25 = sshll.u32 %s2739_s24, 4  ;;  %s257_s12 = sshll.u32 %s3167_s2, 4  ;;  %s302_s25 = int_to_ptr.vmem [resolvable:$true] %s301_s25  ;;  %s258_s12 = int_to_ptr.hbm [resolvable:$true] %s257_s12 }
  0x11   : > { %2421 = dma.hbm_to_vmem [thread:$0]  (!%p2817_p5), %s300_s21, 1024, %s302_s25, [#allocation14], %s2737_s22, %s2737_s22, %s2738_s23  }
  0x12   : > { %s2740_s13 = smov [#allocation4]   ;;  %s2741_s15 = smov [#allocation9]  }
  0x13   : > { %s230_s14 = sshll.u32 %s2740_s13, 4  ;;  %s259_s17 = sshll.u32 %s2741_s15, 4  ;;  %s231_s14 = int_to_ptr.vmem [resolvable:$true] %s230_s14  ;;  %s260_s17 = int_to_ptr.vmem [resolvable:$true] %s259_s17 }
  0x14   : > { %2406 = dma.hbm_to_vmem [thread:$0]  (!%p2817_p5), %s229_s30, 1024, %s231_s14, [#allocation5], %s2737_s22, %s2737_s22, %s2738_s23  }
  0x15   : > { %s285_s20 = sshll.u32 %s3170_s5, 4  ;;  %s313_s25 = sshll.u32 %s3172_s7, 4  ;;  %s286_s20 = int_to_ptr.hbm [resolvable:$true] %s285_s20  ;;  %s314_s25 = int_to_ptr.hbm [resolvable:$true] %s313_s25 }
  0x16   : > { %2412 = dma.hbm_to_vmem [thread:$0]  (!%p2817_p5), %s258_s12, 64, %s260_s17, [#allocation8]  }
  0x17   : > { %s2742_s26 = smov [#allocation12]   ;;  %s2743_s30 = smov [#allocation15]  }
  0x18   : > { %s287_s29 = sshll.u32 %s2742_s26, 4  ;;  %s315_s9 = sshll.u32 %s2743_s30, 4  ;;  %s288_s29 = int_to_ptr.vmem [resolvable:$true] %s287_s29  ;;  %s316_s9 = int_to_ptr.vmem [resolvable:$true] %s315_s9 }
  0x19   : > { %2418 = dma.hbm_to_vmem [thread:$0]  (!%p2817_p5), %s286_s20, 3072, %s288_s29, [#allocation11], %s2737_s22, %s2737_s22, %s2738_s23  }
  0x1a   : > { %s2744_s11 = smov 128   ;;  %s2745_s13 = smov 8  }
  0x1b   : > { %2424 = dma.hbm_to_vmem [thread:$0]  (!%p2817_p5), %s314_s25, 256, %s316_s9, [#allocation14], %s2744_s11, %s2744_s11, %s2745_s13  }
  0x1c   : > { %331 = sbr.rel (%p2806_p3) target bundleno = 2108 (0x83c), region = 52 }
  0x21   : > { %2712 = dma.done.wait (%p2425_p2), [#allocation5], 1024  }
  0x22   : > { %2714 = vsyncadd (%p2425_p2), [#allocation5], 4294966272 }
  0x23   : > { %2716 = dma.done.wait (%p2425_p2), [#allocation8], 1088  }
  0x24   : > { %2718 = vsyncadd (%p2425_p2), [#allocation8], 4294966208 }
  0x25   : > { %2720 = dma.done.wait (%p2425_p2), [#allocation11], 4096  }
  0x26   : > { %2722 = vsyncadd (%p2425_p2), [#allocation11], 4294963200 }
  0x27   : > { %2724 = dma.done.wait (%p2425_p2), [#allocation14], 1280  }
  0x28   : > { %2726 = vsyncadd (%p2425_p2), [#allocation14], 4294966016  ;;  %v2883_v0 = vld [vmem:[#allocation15] sm:$0x1]  ;;  %v2885_v1 = vld [vmem:[#allocation15 + $0x1] sm:$0x1] }
  0x29   : > { %v2887_v2 = vld [vmem:[#allocation15 + $0x2] sm:$0x1]  ;;  %v2889_v3 = vld [vmem:[#allocation15 + $0x3] sm:$0x1]  ;;  %v2891_v4 = vld [vmem:[#allocation15 + $0x4] sm:$0x1] }
  0x2a   : > { %v2893_v5 = vld [vmem:[#allocation15 + $0x5] sm:$0x1]  ;;  %v2895_v6 = vld [vmem:[#allocation15 + $0x6] sm:$0x1]  ;;  %v2897_v7 = vld [vmem:[#allocation15 + $0x7] sm:$0x1] }
  0x2b   : > { %v2899_v8 = vld [vmem:[#allocation15 + $0x8] sm:$0x1]  ;;  %p1909_p6 = scmp.ge.s32.totalorder %s2798_s28, 1 }
  0x2d   : > { %398 = sbr.rel (%p1909_p6) target bundleno = 581 (0x245), region = 84 }
  0x32   : > { %v2219_v9 = vld [vmem:[#allocation7 + $0x38] sm:$0xff]  ;;  %v2218_v10 = vld [vmem:[#allocation7 + $0x30] sm:$0xff]  ;;  %v2217_v11 = vld [vmem:[#allocation7 + $0x28] sm:$0xff] }
  0x33   : > { %527 = vmatpush.bf16.msra.mxu0 %v2219_v9  ;;  %2323 = vmatpush.bf16.msra.mxu3 %v2219_v9  ;;  %v2216_v12 = vld [vmem:[#allocation7 + $0x20] sm:$0xff]  ;;  %v2215_v13 = vld [vmem:[#allocation7 + $0x18] sm:$0xff]  ;;  %v2214_v14 = vld [vmem:[#allocation7 + $0x10] sm:$0xff] }
  0x34   : > { %v2213_v15 = vld [vmem:[#allocation7 + $0x8] sm:$0xff]  ;;  %v2212_v16 = vld [vmem:[#allocation7] sm:$0xff]  ;;  %v2210_v18 = vld [vmem:[#allocation4 + $0x30] sm:$0xff] }
  0x35   : > { %v2204_v17 = vld [vmem:[#allocation4] sm:$0xff]  ;;  %v2205_v19 = vld [vmem:[#allocation4 + $0x8] sm:$0xff]  ;;  %v2211_v20 = vld [vmem:[#allocation4 + $0x38] sm:$0xff] }
  0x36   : > { %v2206_v21 = vld [vmem:[#allocation4 + $0x10] sm:$0xff]  ;;  %v2207_v22 = vld [vmem:[#allocation4 + $0x18] sm:$0xff]  ;;  %v2224_v26 = vld [vmem:[#allocation10 + $0x20] sm:$0xff] }
  0x37   : > { %528 = vmatpush.bf16.msra.mxu0 %v2218_v10  ;;  %2324 = vmatpush.bf16.msra.mxu3 %v2218_v10  ;;  %v2227_v23 = vld [vmem:[#allocation10 + $0x38] sm:$0xff]  ;;  %v2226_v24 = vld [vmem:[#allocation10 + $0x30] sm:$0xff]  ;;  %v2225_v25 = vld [vmem:[#allocation10 + $0x28] sm:$0xff] }
  0x38   : > { %665 = vmatpush.bf16.msra.mxu1 %v2227_v23  ;;  %v2208_v27 = vld [vmem:[#allocation4 + $0x20] sm:$0xff]  ;;  %v2209_v29 = vld [vmem:[#allocation4 + $0x28] sm:$0xff]  ;;  %v2222_v30 = vld [vmem:[#allocation10 + $0x10] sm:$0xff] }
  0x39   : > { %v2223_v28 = vld [vmem:[#allocation10 + $0x18] sm:$0xff]  ;;  %v2221_v31 = vld [vmem:[#allocation10 + $0x8] sm:$0xff]  ;;  %v2220_v32 = vld [vmem:[#allocation10] sm:$0xff] }
  0x3a   : > { %v2235_v51 = vld [vmem:[#allocation12 + $0x38] sm:$0xff]  ;;  %v2234_v52 = vld [vmem:[#allocation12 + $0x30] sm:$0xff]  ;;  %v2233_v54 = vld [vmem:[#allocation12 + $0x28] sm:$0xff] }
  0x3b   : > { %529 = vmatpush.bf16.msra.mxu0 %v2217_v11  ;;  %2325 = vmatpush.bf16.msra.mxu3 %v2217_v11  ;;  %v2232_v55 = vld [vmem:[#allocation12 + $0x20] sm:$0xff]  ;;  %v2231_v61 = vld [vmem:[#allocation12 + $0x18] sm:$0xff]  ;;  %v2230_v62 = vld [vmem:[#allocation12 + $0x10] sm:$0xff]  ;;  %v616_v11 = vperm.slane %v2883_v0, 0 }
  0x3c   : > { %666 = vmatpush.bf16.msra.mxu1 %v2226_v24  ;;  %787 = vmatpush.bf16.msra.mxu2 %v2235_v51  ;;  %v2229_v63 = vld [vmem:[#allocation12 + $0x8] sm:$0xff]  ;;  %v2228_v9 = vld [vmem:[#allocation12] sm:$0xff] }
  0x3f   : > { %530 = vmatpush.bf16.msra.mxu0 %v2216_v12  ;;  %2326 = vmatpush.bf16.msra.mxu3 %v2216_v12 }
  0x40   : > { %667 = vmatpush.bf16.msra.mxu1 %v2225_v25  ;;  %788 = vmatpush.bf16.msra.mxu2 %v2234_v52 }
  0x43   : > { %531 = vmatpush.bf16.msra.mxu0 %v2215_v13  ;;  %2327 = vmatpush.bf16.msra.mxu3 %v2215_v13 }
  0x44   : > { %668 = vmatpush.bf16.msra.mxu1 %v2224_v26  ;;  %789 = vmatpush.bf16.msra.mxu2 %v2233_v54 }
  0x47   : > { %532 = vmatpush.bf16.msra.mxu0 %v2214_v14  ;;  %2328 = vmatpush.bf16.msra.mxu3 %v2214_v14 }
  0x48   : > { %669 = vmatpush.bf16.msra.mxu1 %v2223_v28  ;;  %790 = vmatpush.bf16.msra.mxu2 %v2232_v55 }
  0x4b   : > { %533 = vmatpush.bf16.msra.mxu0 %v2213_v15  ;;  %2329 = vmatpush.bf16.msra.mxu3 %v2213_v15 }
  0x4c   : > { %670 = vmatpush.bf16.msra.mxu1 %v2222_v30  ;;  %791 = vmatpush.bf16.msra.mxu2 %v2231_v61 }
  0x4f   : > { %534 = vmatpush.bf16.msra.mxu0 %v2212_v16  ;;  %2330 = vmatpush.bf16.msra.mxu3 %v2212_v16 }
  0x50   : > { %671 = vmatpush.bf16.msra.mxu1 %v2221_v31  ;;  %792 = vmatpush.bf16.msra.mxu2 %v2230_v62 }
  0x52   : > { %535 = vmatmul.bf16.vlgmr.msra.gmra.mxu0 %v2204_v17  ;;  %565 = vmatmul.bf16.vlgmr.msra.gmra.mxu3 %v2210_v18 }
  0x53   : > { %2331 = vmatpush.bf16.msrb.mxu3 %v2227_v23 }
  0x54   : > { %672 = vmatpush.bf16.msra.mxu1 %v2220_v32  ;;  %793 = vmatpush.bf16.msra.mxu2 %v2229_v63 }
  0x57   : > { %2332 = vmatpush.bf16.msrb.mxu3 %v2226_v24 }
  0x58   : > { %794 = vmatpush.bf16.msra.mxu2 %v2228_v9 }
  0x5b   : > { %2333 = vmatpush.bf16.msrb.mxu3 %v2225_v25 }
  0x5f   : > { %2334 = vmatpush.bf16.msrb.mxu3 %v2224_v26 }
  0x62   : > { %540 = vmatmul.bf16.gmra.mxu0 %v2205_v19  ;;  %570 = vmatmul.bf16.gmra.mxu3 %v2211_v20 }
  0x63   : > { %2335 = vmatpush.bf16.msrb.mxu3 %v2223_v28 }
  0x67   : > { %2336 = vmatpush.bf16.msrb.mxu3 %v2222_v30 }
  0x6b   : > { %2337 = vmatpush.bf16.msrb.mxu3 %v2221_v31 }
  0x6f   : > { %2338 = vmatpush.bf16.msrb.mxu3 %v2220_v32 }
  0x72   : > { %545 = vmatmul.bf16.gmra.mxu0 %v2206_v21 }
  0x73   : > { %2339 = vmatpush.bf16.msra.mxu3 %v2235_v51 }
  0x77   : > { %2340 = vmatpush.bf16.msra.mxu3 %v2234_v52 }
  0x7b   : > { %2341 = vmatpush.bf16.msra.mxu3 %v2233_v54 }
  0x7f   : > { %2342 = vmatpush.bf16.msra.mxu3 %v2232_v55 }
  0x82   : > { %550 = vmatmul.bf16.gmra.mxu0 %v2207_v22 }
  0x83   : > { %2343 = vmatpush.bf16.msra.mxu3 %v2231_v61 }
  0x87   : > { %2344 = vmatpush.bf16.msra.mxu3 %v2230_v62 }
  0x8b   : > { %2345 = vmatpush.bf16.msra.mxu3 %v2229_v63 }
  0x8f   : > { %2346 = vmatpush.bf16.msra.mxu3 %v2228_v9 }
  0x92   : > { %555 = vmatmul.bf16.gmra.mxu0 %v2208_v27 }
  0xa2   : > { %560 = vmatmul.bf16.gmra.mxu0 %v2209_v29 }
  0xcf   : > { %v536_v33 = vpop.f32.mrf.mxu0 }
  0xd5   : > { %v566_v34 = vpop.f32.mrf.mxu3 }
  0xd7   : > { %v538_v35 = vpop.f32.mrf.mxu0 }
  0xd8   : > { %v608_v36 = vpack.c.bf16 %v538_v35, %v536_v33 }
  0xda   : > { %673 = vmatmul.bf16.vlgmr.msra.gmra.mxu1 %v608_v36 }
  0xdd   : > { %v568_v37 = vpop.f32.mrf.mxu3 }
  0xde   : > { %v614_v38 = vpack.c.bf16 %v568_v37, %v566_v34 }
  0xdf   : > { %v541_v39 = vpop.f32.mrf.mxu0 }
  0xe0   : > { %703 = vmatmul.bf16.vlgmr.msrb.gmra.mxu3 %v614_v38 }
  0xe5   : > { %v571_v40 = vpop.f32.mrf.mxu3 }
  0xe7   : > { %v543_v41 = vpop.f32.mrf.mxu0 }
  0xe8   : > { %v609_v42 = vpack.c.bf16 %v543_v41, %v541_v39 }
  0xea   : > { %678 = vmatmul.bf16.gmra.mxu1 %v609_v42 }
  0xed   : > { %v573_v43 = vpop.f32.mrf.mxu3 }
  0xee   : > { %v615_v44 = vpack.c.bf16 %v573_v43, %v571_v40 }
  0xef   : > { %v546_v45 = vpop.f32.mrf.mxu0 }
  0xf0   : > { %708 = vmatmul.bf16.gmra.mxu3 %v615_v44 }
  0xf7   : > { %v548_v46 = vpop.f32.mrf.mxu0 }
  0xf8   : > { %v610_v47 = vpack.c.bf16 %v548_v46, %v546_v45 }
  0xfa   : > { %683 = vmatmul.bf16.gmra.mxu1 %v610_v47 }
  0xff   : > { %v551_v48 = vpop.f32.mrf.mxu0 }
 0x107   : > { %v553_v49 = vpop.f32.mrf.mxu0 }
 0x108   : > { %v611_v50 = vpack.c.bf16 %v553_v49, %v551_v48 }
 0x10a   : > { %688 = vmatmul.bf16.gmra.mxu1 %v611_v50 }
 0x10f   : > { %v556_v53 = vpop.f32.mrf.mxu0 }
 0x117   : > { %v558_v56 = vpop.f32.mrf.mxu0 }
 0x118   : > { %v612_v57 = vpack.c.bf16 %v558_v56, %v556_v53 }
 0x11a   : > { %693 = vmatmul.bf16.gmra.mxu1 %v612_v57 }
 0x11f   : > { %v561_v58 = vpop.f32.mrf.mxu0 }
 0x127   : > { %v563_v59 = vpop.f32.mrf.mxu0 }
 0x128   : > { %v613_v60 = vpack.c.bf16 %v563_v59, %v561_v58 }
 0x12a   : > { %698 = vmatmul.bf16.gmra.mxu1 %v613_v60 }
 0x157   : > { %v674_v10 = vpop.f32.mrf.mxu1 }
 0x158   : > { %v675_v12 = vadd.f32 %v674_v10, %v616_v11 }
 0x15a   : > { %v714_v15 = vmax.f32 %v675_v12, 0.0  ;;  %v738_v12 = vperm.slane %v2885_v1, 0 }
 0x15f   : > { %v676_v13 = vpop.f32.mrf.mxu1 }
 0x160   : > { %v677_v14 = vadd.f32 %v676_v13, %v616_v11 }
 0x162   : > { %v715_v16 = vmax.f32 %v677_v14, 0.0 }
 0x163   : > { %v704_v17 = vpop.f32.mrf.mxu3 }
 0x164   : > { %v730_v18 = vpack.c.bf16 %v715_v16, %v714_v15  ;;  %v705_v20 = vadd.f32 %v704_v17, %v616_v11 }
 0x166   : > { %795 = vmatmul.bf16.vlgmr.msra.gmra.mxu2 %v730_v18  ;;  %v726_v22 = vmax.f32 %v705_v20, 0.0 }
 0x167   : > { %v679_v19 = vpop.f32.mrf.mxu1 }
 0x168   : > { %v680_v24 = vadd.f32 %v679_v19, %v616_v11 }
 0x16a   : > { %v716_v29 = vmax.f32 %v680_v24, 0.0 }
 0x16b   : > { %v706_v21 = vpop.f32.mrf.mxu3 }
 0x16c   : > { %v707_v23 = vadd.f32 %v706_v21, %v616_v11 }
 0x16e   : > { %v727_v25 = vmax.f32 %v707_v23, 0.0 }
 0x16f   : > { %v681_v26 = vpop.f32.mrf.mxu1 }
 0x170   : > { %v682_v27 = vadd.f32 %v681_v26, %v616_v11  ;;  %v736_v28 = vpack.c.bf16 %v727_v25, %v726_v22 }
 0x172   : > { %v717_v0 = vmax.f32 %v682_v27, 0.0  ;;  %825 = vmatmul.bf16.vlgmr.msra.gmra.mxu3 %v736_v28 }
 0x173   : > { %v709_v30 = vpop.f32.mrf.mxu3 }
 0x174   : > { %v731_v31 = vpack.c.bf16 %v717_v0, %v716_v29  ;;  %v710_v33 = vadd.f32 %v709_v30, %v616_v11 }
 0x176   : > { %800 = vmatmul.bf16.gmra.mxu2 %v731_v31  ;;  %v728_v35 = vmax.f32 %v710_v33, 0.0 }
 0x177   : > { %v684_v32 = vpop.f32.mrf.mxu1 }
 0x178   : > { %v685_v37 = vadd.f32 %v684_v32, %v616_v11 }
 0x17a   : > { %v718_v42 = vmax.f32 %v685_v37, 0.0 }
 0x17b   : > { %v711_v34 = vpop.f32.mrf.mxu3 }
 0x17c   : > { %v712_v36 = vadd.f32 %v711_v34, %v616_v11 }
 0x17e   : > { %v729_v38 = vmax.f32 %v712_v36, 0.0 }
 0x17f   : > { %v686_v39 = vpop.f32.mrf.mxu1 }
 0x180   : > { %v687_v40 = vadd.f32 %v686_v39, %v616_v11  ;;  %v737_v41 = vpack.c.bf16 %v729_v38, %v728_v35 }
 0x182   : > { %v719_v43 = vmax.f32 %v687_v40, 0.0  ;;  %830 = vmatmul.bf16.gmra.mxu3 %v737_v41 }
 0x184   : > { %v732_v44 = vpack.c.bf16 %v719_v43, %v718_v42 }
 0x186   : > { %805 = vmatmul.bf16.gmra.mxu2 %v732_v44 }
 0x187   : > { %v689_v45 = vpop.f32.mrf.mxu1 }
 0x188   : > { %v690_v46 = vadd.f32 %v689_v45, %v616_v11 }
 0x18a   : > { %v720_v49 = vmax.f32 %v690_v46, 0.0 }
 0x18f   : > { %v691_v47 = vpop.f32.mrf.mxu1 }
 0x190   : > { %v692_v48 = vadd.f32 %v691_v47, %v616_v11 }
 0x192   : > { %v721_v50 = vmax.f32 %v692_v48, 0.0 }
 0x194   : > { %v733_v51 = vpack.c.bf16 %v721_v50, %v720_v49 }
 0x196   : > { %810 = vmatmul.bf16.gmra.mxu2 %v733_v51 }
 0x197   : > { %v694_v52 = vpop.f32.mrf.mxu1 }
 0x198   : > { %v695_v53 = vadd.f32 %v694_v52, %v616_v11 }
 0x19a   : > { %v722_v56 = vmax.f32 %v695_v53, 0.0 }
 0x19f   : > { %v696_v54 = vpop.f32.mrf.mxu1 }
 0x1a0   : > { %v697_v55 = vadd.f32 %v696_v54, %v616_v11 }
 0x1a2   : > { %v723_v57 = vmax.f32 %v697_v55, 0.0 }
 0x1a4   : > { %v734_v58 = vpack.c.bf16 %v723_v57, %v722_v56 }
 0x1a6   : > { %815 = vmatmul.bf16.gmra.mxu2 %v734_v58 }
 0x1a7   : > { %v699_v59 = vpop.f32.mrf.mxu1 }
 0x1a8   : > { %v700_v60 = vadd.f32 %v699_v59, %v616_v11 }
 0x1aa   : > { %v724_v63 = vmax.f32 %v700_v60, 0.0 }
 0x1af   : > { %v701_v61 = vpop.f32.mrf.mxu1 }
 0x1b0   : > { %v702_v62 = vadd.f32 %v701_v61, %v616_v11 }
 0x1b2   : > { %v725_v9 = vmax.f32 %v702_v62, 0.0 }
 0x1b4   : > { %v735_v10 = vpack.c.bf16 %v725_v9, %v724_v63 }
 0x1b6   : > { %820 = vmatmul.bf16.gmra.mxu2 %v735_v10 }
 0x1e9   : > { %v796_v13 = vpop.f32.mrf.mxu2 }
 0x1ea   : > { %v797_v14 = vadd.f32 %v796_v13, %v738_v12 }
 0x1ec   : > { %836 = vst [vmem:[#allocation2 + $0x30] sm:$0xff] %v797_v14 }
 0x1f1   : > { %v798_v15 = vpop.f32.mrf.mxu2 }
 0x1f2   : > { %v799_v16 = vadd.f32 %v798_v15, %v738_v12 }
 0x1f4   : > { %837 = vst [vmem:[#allocation2] sm:$0xff] %v799_v16 }
 0x1f5   : > { %v826_v17 = vpop.f32.mrf.mxu3 }
 0x1f6   : > { %v827_v18 = vadd.f32 %v826_v17, %v738_v12 }
 0x1f8   : > { %848 = vst [vmem:[#allocation2 + $0x60] sm:$0xff] %v827_v18 }
 0x1f9   : > { %v801_v19 = vpop.f32.mrf.mxu2 }
 0x1fa   : > { %v802_v20 = vadd.f32 %v801_v19, %v738_v12 }
 0x1fc   : > { %838 = vst [vmem:[#allocation2 + $0x58] sm:$0xff] %v802_v20 }
 0x1fd   : > { %v828_v21 = vpop.f32.mrf.mxu3 }
 0x1fe   : > { %v829_v11 = vadd.f32 %v828_v21, %v738_v12 }
 0x200   : > { %849 = vst [vmem:[#allocation2 + $0x70] sm:$0xff] %v829_v11 }
 0x201   : > { %v803_v22 = vpop.f32.mrf.mxu2 }
 0x202   : > { %v804_v23 = vadd.f32 %v803_v22, %v738_v12 }
 0x204   : > { %839 = vst [vmem:[#allocation2 + $0x18] sm:$0xff] %v804_v23 }
 0x205   : > { %v831_v24 = vpop.f32.mrf.mxu3 }
 0x206   : > { %v832_v1 = vadd.f32 %v831_v24, %v738_v12 }
 0x208   : > { %850 = vst [vmem:[#allocation2 + $0x78] sm:$0xff] %v832_v1 }
 0x209   : > { %v806_v25 = vpop.f32.mrf.mxu2 }
 0x20a   : > { %v807_v26 = vadd.f32 %v806_v25, %v738_v12 }
 0x20c   : > { %840 = vst [vmem:[#allocation2 + $0x50] sm:$0xff] %v807_v26 }
 0x20d   : > { %v833_v27 = vpop.f32.mrf.mxu3 }
 0x20e   : > { %v834_v28 = vadd.f32 %v833_v27, %v738_v12 }
 0x210   : > { %851 = vst [vmem:[#allocation2 + $0x28] sm:$0xff] %v834_v28 }
 0x211   : > { %v808_v29 = vpop.f32.mrf.mxu2 }
 0x212   : > { %v809_v0 = vadd.f32 %v808_v29, %v738_v12 }
 0x214   : > { %841 = vst [vmem:[#allocation2 + $0x68] sm:$0xff] %v809_v0 }
 0x219   : > { %v811_v30 = vpop.f32.mrf.mxu2 }
 0x21a   : > { %v812_v31 = vadd.f32 %v811_v30, %v738_v12 }
 0x21c   : > { %842 = vst [vmem:[#allocation2 + $0x8] sm:$0xff] %v812_v31 }
 0x221   : > { %v813_v32 = vpop.f32.mrf.mxu2 }
 0x222   : > { %v814_v33 = vadd.f32 %v813_v32, %v738_v12 }
 0x224   : > { %843 = vst [vmem:[#allocation2 + $0x48] sm:$0xff] %v814_v33 }
 0x229   : > { %v816_v34 = vpop.f32.mrf.mxu2 }
 0x22a   : > { %v817_v35 = vadd.f32 %v816_v34, %v738_v12 }
 0x22c   : > { %844 = vst [vmem:[#allocation2 + $0x40] sm:$0xff] %v817_v35 }
 0x231   : > { %v818_v36 = vpop.f32.mrf.mxu2 }
 0x232   : > { %v819_v37 = vadd.f32 %v818_v36, %v738_v12 }
 0x234   : > { %845 = vst [vmem:[#allocation2 + $0x20] sm:$0xff] %v819_v37 }
 0x239   : > { %v821_v38 = vpop.f32.mrf.mxu2 }
 0x23a   : > { %v822_v39 = vadd.f32 %v821_v38, %v738_v12 }
 0x23c   : > { %846 = vst [vmem:[#allocation2 + $0x10] sm:$0xff] %v822_v39 }
 0x241   : > { %v823_v40 = vpop.f32.mrf.mxu2 }
 0x242   : > { %v824_v41 = vadd.f32 %v823_v40, %v738_v12 }
 0x244   : > { %847 = vst [vmem:[#allocation2 + $0x38] sm:$0xff] %v824_v41 }
 0x245 PF: > { %p2038_p7 = scmp.ne.s32.totalorder %s2798_s28, 1 }
 0x247   : > { %855 = sbr.rel (%p2038_p7) target bundleno = 801 (0x321), region = 88 }
 0x24c   : > { %v2907_v42 = vld [vmem:[#allocation2 + $0x78] sm:$0xff]  ;;  %v2909_v43 = vld [vmem:[#allocation2 + $0x28] sm:$0xff]  ;;  %v2911_v44 = vld [vmem:[#allocation2 + $0x60] sm:$0xff] }
 0x24d   : > { %v902_v45 = vpack.c.bf16 %v2909_v43, %v2907_v42  ;;  %v886_v46 = vmul.f32 %v2907_v42, %v2907_v42  ;;  %v887_v47 = vmul.f32 %v2909_v43, %v2909_v43  ;;  %v2919_v48 = vld [vmem:[#allocation2 + $0x70] sm:$0xff]  ;;  %v884_v49 = vmul.f32 %v2911_v44, %v2911_v44  ;;  %v2927_v52 = vld [vmem:[#allocation2 + $0x38] sm:$0xff]  ;;  %v2935_v58 = vld [vmem:[#allocation2 + $0x40] sm:$0xff] }
 0x24e   : > { %v885_v50 = vmul.f32 %v2919_v48, %v2919_v48  ;;  %v2925_v51 = vld [vmem:[#allocation2 + $0x10] sm:$0xff]  ;;  %v900_v54 = vpack.c.bf16 %v2919_v48, %v2911_v44  ;;  %v883_v57 = vmul.f32 %v2927_v52, %v2927_v52  ;;  %v2937_v59 = vld [vmem:[#allocation2 + $0x20] sm:$0xff]  ;;  %v880_v62 = vmul.f32 %v2935_v58, %v2935_v58  ;;  %v2945_v9 = vld [vmem:[#allocation2 + $0x8] sm:$0xff] }
 0x24f   : > { %905 = vmatpush.bf16.msra.mxu0 %v902_v45  ;;  %v903_v53 = vpack.c.bf16 %v887_v47, %v886_v46  ;;  %v882_v56 = vmul.f32 %v2925_v51, %v2925_v51  ;;  %v898_v60 = vpack.c.bf16 %v2927_v52, %v2925_v51  ;;  %v881_v63 = vmul.f32 %v2937_v59, %v2937_v59  ;;  %v2947_v10 = vld [vmem:[#allocation2 + $0x48] sm:$0xff]  ;;  %v2955_v16 = vld [vmem:[#allocation2 + $0x50] sm:$0xff]  ;;  %v2965_v11 = vld [vmem:[#allocation2 + $0x58] sm:$0xff] }
 0x250   : > { %v901_v55 = vpack.c.bf16 %v885_v50, %v884_v49  ;;  %v896_v12 = vpack.c.bf16 %v2937_v59, %v2935_v58  ;;  %v878_v14 = vmul.f32 %v2945_v9, %v2945_v9  ;;  %v879_v15 = vmul.f32 %v2947_v10, %v2947_v10  ;;  %v2957_v17 = vld [vmem:[#allocation2 + $0x68] sm:$0xff]  ;;  %v2967_v22 = vld [vmem:[#allocation2 + $0x18] sm:$0xff]  ;;  %v856_v26 = vld [vmem:[#allocation2 + $0x30] sm:$0xff] }
 0x251   : > { %918 = vmatpush.bf16.msra.mxu1 %v903_v53  ;;  %v899_v61 = vpack.c.bf16 %v883_v57, %v882_v56  ;;  %v897_v13 = vpack.c.bf16 %v881_v63, %v880_v62  ;;  %v894_v18 = vpack.c.bf16 %v2947_v10, %v2945_v9  ;;  %v876_v20 = vmul.f32 %v2955_v16, %v2955_v16  ;;  %v857_v27 = vld [vmem:[#allocation2] sm:$0xff] }
 0x252   : > { %v895_v19 = vpack.c.bf16 %v879_v15, %v878_v14  ;;  %v877_v21 = vmul.f32 %v2957_v17, %v2957_v17  ;;  %v892_v23 = vpack.c.bf16 %v2957_v17, %v2955_v16  ;;  %v874_v1 = vmul.f32 %v2965_v11, %v2965_v11  ;;  %v904_v33 = vld [vmem:[%s3168_s3] sm:$0x1] }
 0x253   : > { %906 = vmatpush.bf16.msra.mxu0 %v900_v54  ;;  %v875_v25 = vmul.f32 %v2967_v22, %v2967_v22  ;;  %v890_v28 = vpack.c.bf16 %v2967_v22, %v2965_v11  ;;  %v872_v0 = vmul.f32 %v856_v26, %v856_v26  ;;  %v873_v30 = vmul.f32 %v857_v27, %v857_v27 }
 0x254   : > { %v893_v24 = vpack.c.bf16 %v877_v21, %v876_v20  ;;  %v888_v31 = vpack.c.bf16 %v857_v27, %v856_v26 }
 0x255   : > { %919 = vmatpush.bf16.msra.mxu1 %v901_v55  ;;  %v891_v29 = vpack.c.bf16 %v875_v25, %v874_v1  ;;  %v889_v32 = vpack.c.bf16 %v873_v30, %v872_v0 }
 0x257   : > { %907 = vmatpush.bf16.msra.mxu0 %v898_v60 }
 0x259   : > { %920 = vmatpush.bf16.msra.mxu1 %v899_v61 }
 0x25b   : > { %908 = vmatpush.bf16.msra.mxu0 %v896_v12 }
 0x25d   : > { %921 = vmatpush.bf16.msra.mxu1 %v897_v13 }
 0x25f   : > { %909 = vmatpush.bf16.msra.mxu0 %v894_v18 }
 0x261   : > { %922 = vmatpush.bf16.msra.mxu1 %v895_v19 }
 0x263   : > { %910 = vmatpush.bf16.msra.mxu0 %v892_v23 }
 0x265   : > { %923 = vmatpush.bf16.msra.mxu1 %v893_v24 }
 0x267   : > { %911 = vmatpush.bf16.msra.mxu0 %v890_v28 }
 0x269   : > { %924 = vmatpush.bf16.msra.mxu1 %v891_v29 }
 0x26b   : > { %912 = vmatpush.bf16.msra.mxu0 %v888_v31 }
 0x26d   : > { %925 = vmatpush.bf16.msra.mxu1 %v889_v32 }
 0x26e   : > { %913 = vmatmul.bf16.vlgmr.msra.gmra.mxu0 %v904_v33 }
 0x270   : > { %926 = vmatmul.bf16.vlgmr.msra.gmra.mxu1 %v904_v33 }
 0x2eb   : > { %v914_v34 = vpop.f32.mrf.mxu0 }
 0x2ec   : > { %v931_v35 = vmul.f32 0.0625, %v914_v34 }
 0x2ed   : > { %v927_v36 = vpop.f32.mrf.mxu1 }
 0x2ee   : > { %v933_v37 = vmul.f32 %v931_v35, %v931_v35  ;;  %v932_v38 = vmul.f32 0.0625, %v927_v36  ;;  %v947_v54 = vperm.slane %v931_v35, 0 }
 0x2f0   : > { %v934_v40 = vsub.f32 %v932_v38, %v933_v37  ;;  %v948_v57 = vsub.f32 %v856_v26, %v947_v54  ;;  %v949_v60 = vsub.f32 %v857_v27, %v947_v54  ;;  %v950_v61 = vsub.f32 %v2965_v11, %v947_v54 }
 0x2f1   : > { %v951_v63 = vsub.f32 %v2967_v22, %v947_v54  ;;  %v952_v12 = vsub.f32 %v2955_v16, %v947_v54  ;;  %v953_v13 = vsub.f32 %v2957_v17, %v947_v54  ;;  %v954_v15 = vsub.f32 %v2945_v9, %v947_v54 }
 0x2f2   : > { %v935_v45 = vmax.f32 %v934_v40, 0.0  ;;  %v955_v18 = vsub.f32 %v2947_v10, %v947_v54  ;;  %v956_v19 = vsub.f32 %v2935_v58, %v947_v54  ;;  %v957_v20 = vsub.f32 %v2937_v59, %v947_v54 }
 0x2f3   : > { %v916_v39 = vpop.f32.mrf.mxu0  ;;  %v958_v21 = vsub.f32 %v2925_v51, %v947_v54  ;;  %v959_v11 = vsub.f32 %v2927_v52, %v947_v54  ;;  %v960_v22 = vsub.f32 %v2911_v44, %v947_v54  ;;  %v961_v16 = vsub.f32 %v2919_v48, %v947_v54 }
 0x2f4   : > { %v936_v46 = vadd.f32 1e-05, %v935_v45  ;;  %v962_v17 = vsub.f32 %v2907_v42, %v947_v54  ;;  %v982_v9 = vperm.slane %v2889_v3, 0 }
 0x2f5   : > { %v929_v41 = vpop.f32.mrf.mxu1 }
 0x2f6   : > { %2461 = vrsqrt.f32 %v936_v46  ;;  %vm943_vm1 = vweird.f32 %v936_v46 }
 0x2fc   : > { %v2462_v47 = vpop.eup %2461 }
 0x2fd   : > { %v938_v49 = vmul.f32 %v2462_v47, %v936_v46  ;;  %vm944_vm0 = vweird.f32 %v2462_v47 }
 0x2fe   : > { %vm945_vm2 = vmor %vm943_vm1, %vm944_vm0 }
 0x2ff   : > { %v939_v50 = vmul.f32 %v2462_v47, %v938_v49 }
 0x301   : > { %v940_v53 = vmul.f32 0.5, %v939_v50 }
 0x303   : > { %v941_v55 = vsub.f32 1.5, %v940_v53 }
 0x305   : > { %v942_v56 = vmul.f32 %v2462_v47, %v941_v55 }
 0x307   : > { %v946_v62 = vsel %vm945_vm2, %v2462_v47, %v942_v56 }
 0x308   : > { %v964_v14 = vmul.f32 %v946_v62, %v2887_v2  ;;  %v963_v2 = vsub.f32 %v2909_v43, %v947_v54 }
 0x30a   : > { %v965_v23 = vperm.slane %v964_v14, 0 }
 0x30c   : > { %v966_v10 = vmul.f32 %v965_v23, %v948_v57  ;;  %v967_v24 = vmul.f32 %v965_v23, %v949_v60  ;;  %v968_v58 = vmul.f32 %v965_v23, %v950_v61  ;;  %v969_v1 = vmul.f32 %v965_v23, %v951_v63 }
 0x30d   : > { %v970_v59 = vmul.f32 %v965_v23, %v952_v12  ;;  %v971_v25 = vmul.f32 %v965_v23, %v953_v13  ;;  %v972_v51 = vmul.f32 %v965_v23, %v954_v15  ;;  %v973_v26 = vmul.f32 %v965_v23, %v955_v18 }
 0x30e   : > { %v974_v52 = vmul.f32 %v965_v23, %v956_v19  ;;  %v975_v27 = vmul.f32 %v965_v23, %v957_v20  ;;  %v976_v44 = vmul.f32 %v965_v23, %v958_v21  ;;  %v977_v28 = vmul.f32 %v965_v23, %v959_v11 }
 0x30f   : > { %v978_v29 = vmul.f32 %v965_v23, %v960_v22  ;;  %v979_v48 = vmul.f32 %v965_v23, %v961_v16  ;;  %v980_v0 = vmul.f32 %v965_v23, %v962_v17  ;;  %v981_v42 = vmul.f32 %v965_v23, %v963_v2 }
 0x310   : > { %v983_v30 = vadd.f32 %v982_v9, %v966_v10  ;;  %v984_v43 = vadd.f32 %v982_v9, %v967_v24  ;;  %v985_v31 = vadd.f32 %v982_v9, %v968_v58  ;;  %v986_v3 = vadd.f32 %v982_v9, %v969_v1 }
 0x311   : > { %v987_v32 = vadd.f32 %v982_v9, %v970_v59  ;;  %v988_v33 = vadd.f32 %v982_v9, %v971_v25  ;;  %v989_v34 = vadd.f32 %v982_v9, %v972_v51  ;;  %v990_v35 = vadd.f32 %v982_v9, %v973_v26 }
 0x312   : > { %v991_v36 = vadd.f32 %v982_v9, %v974_v52  ;;  %v992_v37 = vadd.f32 %v982_v9, %v975_v27  ;;  %v993_v38 = vadd.f32 %v982_v9, %v976_v44  ;;  %v994_v39 = vadd.f32 %v982_v9, %v977_v28 }
 0x313   : > { %v995_v40 = vadd.f32 %v982_v9, %v978_v29  ;;  %v996_v41 = vadd.f32 %v982_v9, %v979_v48  ;;  %v997_v45 = vadd.f32 %v982_v9, %v980_v0  ;;  %v998_v46 = vadd.f32 %v982_v9, %v981_v42 }
 0x314   : > { %v999_v47 = vmax.f32 %v983_v30, 0.0  ;;  %v1000_v49 = vmax.f32 %v984_v43, 0.0  ;;  %v1001_v50 = vmax.f32 %v985_v31, 0.0  ;;  %v1002_v53 = vmax.f32 %v986_v3, 0.0 }
 0x315   : > { %v1003_v54 = vmax.f32 %v987_v32, 0.0  ;;  %v1004_v55 = vmax.f32 %v988_v33, 0.0  ;;  %v1005_v56 = vmax.f32 %v989_v34, 0.0  ;;  %v1006_v57 = vmax.f32 %v990_v35, 0.0 }
 0x316   : > { %v1007_v60 = vmax.f32 %v991_v36, 0.0  ;;  %v1008_v61 = vmax.f32 %v992_v37, 0.0  ;;  %v1009_v62 = vmax.f32 %v993_v38, 0.0  ;;  %v1010_v63 = vmax.f32 %v994_v39, 0.0 }
 0x317   : > { %v1011_v12 = vmax.f32 %v995_v40, 0.0  ;;  %v1012_v13 = vmax.f32 %v996_v41, 0.0  ;;  %v2279_v14 = vpack.c.bf16 %v1000_v49, %v999_v47  ;;  %v2284_v15 = vpack.c.bf16 %v1002_v53, %v1001_v50 }
 0x318   : > { %v2289_v18 = vpack.c.bf16 %v1004_v55, %v1003_v54  ;;  %v1013_v19 = vmax.f32 %v997_v45, 0.0  ;;  %v1014_v20 = vmax.f32 %v998_v46, 0.0  ;;  %v2294_v21 = vpack.c.bf16 %v1006_v57, %v1005_v56 }
 0x319   : > { %2280 = vst [vmem:[#allocation3 + $0x28] sm:$0xff] %v2279_v14   ;;  %v2299_v11 = vpack.c.bf16 %v1008_v61, %v1007_v60  ;;  %v2304_v22 = vpack.c.bf16 %v1010_v63, %v1009_v62  ;;  %v2309_v23 = vpack.c.bf16 %v1012_v13, %v1011_v12 }
 0x31a   : > { %2316 = vst [vmem:[#allocation3] sm:$0xff] %v2284_v15   ;;  %v2314_v16 = vpack.c.bf16 %v1014_v20, %v1013_v19 }
 0x31b   : > { %2317 = vst [vmem:[#allocation3 + $0x10] sm:$0xff] %v2289_v18  }
 0x31c   : > { %2318 = vst [vmem:[#allocation3 + $0x20] sm:$0xff] %v2294_v21  }
 0x31d   : > { %2319 = vst [vmem:[#allocation3 + $0x18] sm:$0xff] %v2299_v11  }
 0x31e   : > { %2320 = vst [vmem:[#allocation3 + $0x8] sm:$0xff] %v2304_v22  }
 0x31f   : > { %2321 = vst [vmem:[#allocation3 + $0x38] sm:$0xff] %v2309_v23  }
 0x320   : > { %2322 = vst [vmem:[#allocation3 + $0x30] sm:$0xff] %v2314_v16  }
 0x321 PF: > { %p1048_p8 = scmp.lt.s32.totalorder %s2798_s28, 2 }
 0x323   : > { %p1049_p9 = pnand %p1909_p6, %p1048_p8 }
 0x325   : > { %1052 = sbr.rel (%p1049_p9) target bundleno = 1341 (0x53d), region = 92 }
 0x32a   : > { %v2251_v17 = vld [vmem:[#allocation3 + $0x30] sm:$0xff]  ;;  %v2250_v2 = vld [vmem:[#allocation3 + $0x38] sm:$0xff]  ;;  %v2249_v9 = vld [vmem:[#allocation3 + $0x8] sm:$0xff]  ;;  %v1272_v23 = vperm.slane %v2891_v4, 0 }
 0x32b   : > { %1181 = vmatpush.bf16.msra.mxu0 %v2251_v17  ;;  %2347 = vmatpush.bf16.msra.mxu3 %v2251_v17  ;;  %v2248_v10 = vld [vmem:[#allocation3 + $0x18] sm:$0xff]  ;;  %v2247_v24 = vld [vmem:[#allocation3 + $0x20] sm:$0xff]  ;;  %v2246_v58 = vld [vmem:[#allocation3 + $0x10] sm:$0xff] }
 0x32c   : > { %v2245_v1 = vld [vmem:[#allocation3] sm:$0xff]  ;;  %v2244_v59 = vld [vmem:[#allocation3 + $0x28] sm:$0xff]  ;;  %v2242_v51 = vld [vmem:[#allocation4 + $0x30] sm:$0xff] }
 0x32d   : > { %v2236_v25 = vld [vmem:[#allocation4] sm:$0xff]  ;;  %v2237_v26 = vld [vmem:[#allocation4 + $0x8] sm:$0xff]  ;;  %v2243_v52 = vld [vmem:[#allocation4 + $0x38] sm:$0xff] }
 0x32e   : > { %v2238_v27 = vld [vmem:[#allocation4 + $0x10] sm:$0xff]  ;;  %v2239_v44 = vld [vmem:[#allocation4 + $0x18] sm:$0xff]  ;;  %v2256_v0 = vld [vmem:[#allocation12 + $0x60] sm:$0xff] }
 0x32f   : > { %1182 = vmatpush.bf16.msra.mxu0 %v2250_v2  ;;  %2348 = vmatpush.bf16.msra.mxu3 %v2250_v2  ;;  %v2259_v28 = vld [vmem:[#allocation12 + $0x78] sm:$0xff]  ;;  %v2258_v29 = vld [vmem:[#allocation12 + $0x70] sm:$0xff]  ;;  %v2257_v48 = vld [vmem:[#allocation12 + $0x68] sm:$0xff] }
 0x330   : > { %1321 = vmatpush.bf16.msra.mxu1 %v2259_v28  ;;  %v2240_v42 = vld [vmem:[#allocation4 + $0x20] sm:$0xff]  ;;  %v2241_v43 = vld [vmem:[#allocation4 + $0x28] sm:$0xff]  ;;  %v2254_v31 = vld [vmem:[#allocation12 + $0x50] sm:$0xff] }
 0x331   : > { %v2255_v30 = vld [vmem:[#allocation12 + $0x58] sm:$0xff]  ;;  %v2253_v3 = vld [vmem:[#allocation12 + $0x48] sm:$0xff]  ;;  %v2252_v32 = vld [vmem:[#allocation12 + $0x40] sm:$0xff] }
 0x332   : > { %v2267_v57 = vld [vmem:[#allocation12 + $0xb8] sm:$0xff]  ;;  %v2266_v60 = vld [vmem:[#allocation12 + $0xb0] sm:$0xff]  ;;  %v2265_v62 = vld [vmem:[#allocation12 + $0xa8] sm:$0xff] }
 0x333   : > { %1183 = vmatpush.bf16.msra.mxu0 %v2249_v9  ;;  %2349 = vmatpush.bf16.msra.mxu3 %v2249_v9  ;;  %v2264_v63 = vld [vmem:[#allocation12 + $0xa0] sm:$0xff]  ;;  %v2263_v19 = vld [vmem:[#allocation12 + $0x98] sm:$0xff]  ;;  %v2262_v20 = vld [vmem:[#allocation12 + $0x90] sm:$0xff] }
 0x334   : > { %1322 = vmatpush.bf16.msra.mxu1 %v2258_v29  ;;  %1443 = vmatpush.bf16.msra.mxu2 %v2267_v57  ;;  %v2261_v21 = vld [vmem:[#allocation12 + $0x88] sm:$0xff]  ;;  %v2260_v11 = vld [vmem:[#allocation12 + $0x80] sm:$0xff] }
 0x337   : > { %1184 = vmatpush.bf16.msra.mxu0 %v2248_v10  ;;  %2350 = vmatpush.bf16.msra.mxu3 %v2248_v10 }
 0x338   : > { %1323 = vmatpush.bf16.msra.mxu1 %v2257_v48  ;;  %1444 = vmatpush.bf16.msra.mxu2 %v2266_v60 }
 0x33b   : > { %1185 = vmatpush.bf16.msra.mxu0 %v2247_v24  ;;  %2351 = vmatpush.bf16.msra.mxu3 %v2247_v24 }
 0x33c   : > { %1324 = vmatpush.bf16.msra.mxu1 %v2256_v0  ;;  %1445 = vmatpush.bf16.msra.mxu2 %v2265_v62 }
 0x33f   : > { %1186 = vmatpush.bf16.msra.mxu0 %v2246_v58  ;;  %2352 = vmatpush.bf16.msra.mxu3 %v2246_v58 }
 0x340   : > { %1325 = vmatpush.bf16.msra.mxu1 %v2255_v30  ;;  %1446 = vmatpush.bf16.msra.mxu2 %v2264_v63 }
 0x343   : > { %1187 = vmatpush.bf16.msra.mxu0 %v2245_v1  ;;  %2353 = vmatpush.bf16.msra.mxu3 %v2245_v1 }
 0x344   : > { %1326 = vmatpush.bf16.msra.mxu1 %v2254_v31  ;;  %1447 = vmatpush.bf16.msra.mxu2 %v2263_v19 }
 0x347   : > { %1188 = vmatpush.bf16.msra.mxu0 %v2244_v59  ;;  %2354 = vmatpush.bf16.msra.mxu3 %v2244_v59 }
 0x348   : > { %1327 = vmatpush.bf16.msra.mxu1 %v2253_v3  ;;  %1448 = vmatpush.bf16.msra.mxu2 %v2262_v20 }
 0x34a   : > { %1189 = vmatmul.bf16.vlgmr.msra.gmra.mxu0 %v2236_v25  ;;  %1219 = vmatmul.bf16.vlgmr.msra.gmra.mxu3 %v2242_v51 }
 0x34b   : > { %2355 = vmatpush.bf16.msrb.mxu3 %v2259_v28 }
 0x34c   : > { %1328 = vmatpush.bf16.msra.mxu1 %v2252_v32  ;;  %1449 = vmatpush.bf16.msra.mxu2 %v2261_v21 }
 0x34f   : > { %2356 = vmatpush.bf16.msrb.mxu3 %v2258_v29 }
 0x350   : > { %1450 = vmatpush.bf16.msra.mxu2 %v2260_v11 }
 0x353   : > { %2357 = vmatpush.bf16.msrb.mxu3 %v2257_v48 }
 0x357   : > { %2358 = vmatpush.bf16.msrb.mxu3 %v2256_v0 }
 0x35a   : > { %1194 = vmatmul.bf16.gmra.mxu0 %v2237_v26  ;;  %1224 = vmatmul.bf16.gmra.mxu3 %v2243_v52 }
 0x35b   : > { %2359 = vmatpush.bf16.msrb.mxu3 %v2255_v30 }
 0x35f   : > { %2360 = vmatpush.bf16.msrb.mxu3 %v2254_v31 }
 0x363   : > { %2361 = vmatpush.bf16.msrb.mxu3 %v2253_v3 }
 0x367   : > { %2362 = vmatpush.bf16.msrb.mxu3 %v2252_v32 }
 0x36a   : > { %1199 = vmatmul.bf16.gmra.mxu0 %v2238_v27 }
 0x36b   : > { %2363 = vmatpush.bf16.msra.mxu3 %v2267_v57 }
 0x36f   : > { %2364 = vmatpush.bf16.msra.mxu3 %v2266_v60 }
 0x373   : > { %2365 = vmatpush.bf16.msra.mxu3 %v2265_v62 }
 0x377   : > { %2366 = vmatpush.bf16.msra.mxu3 %v2264_v63 }
 0x37a   : > { %1204 = vmatmul.bf16.gmra.mxu0 %v2239_v44 }
 0x37b   : > { %2367 = vmatpush.bf16.msra.mxu3 %v2263_v19 }
 0x37f   : > { %2368 = vmatpush.bf16.msra.mxu3 %v2262_v20  ;;  %v1394_v20 = vperm.slane %v2893_v5, 0 }
 0x383   : > { %2369 = vmatpush.bf16.msra.mxu3 %v2261_v21 }
 0x387   : > { %2370 = vmatpush.bf16.msra.mxu3 %v2260_v11 }
 0x38a   : > { %1209 = vmatmul.bf16.gmra.mxu0 %v2240_v42 }
 0x39a   : > { %1214 = vmatmul.bf16.gmra.mxu0 %v2241_v43 }
 0x3c7   : > { %v1190_v33 = vpop.f32.mrf.mxu0 }
 0x3cd   : > { %v1220_v34 = vpop.f32.mrf.mxu3 }
 0x3cf   : > { %v1192_v35 = vpop.f32.mrf.mxu0 }
 0x3d0   : > { %v1264_v36 = vpack.c.bf16 %v1192_v35, %v1190_v33 }
 0x3d2   : > { %1329 = vmatmul.bf16.vlgmr.msra.gmra.mxu1 %v1264_v36 }
 0x3d5   : > { %v1222_v37 = vpop.f32.mrf.mxu3 }
 0x3d6   : > { %v1270_v38 = vpack.c.bf16 %v1222_v37, %v1220_v34 }
 0x3d7   : > { %v1195_v39 = vpop.f32.mrf.mxu0 }
 0x3d8   : > { %1359 = vmatmul.bf16.vlgmr.msrb.gmra.mxu3 %v1270_v38 }
 0x3dd   : > { %v1225_v40 = vpop.f32.mrf.mxu3 }
 0x3df   : > { %v1197_v41 = vpop.f32.mrf.mxu0 }
 0x3e0   : > { %v1265_v45 = vpack.c.bf16 %v1197_v41, %v1195_v39 }
 0x3e2   : > { %1334 = vmatmul.bf16.gmra.mxu1 %v1265_v45 }
 0x3e5   : > { %v1227_v46 = vpop.f32.mrf.mxu3 }
 0x3e6   : > { %v1271_v47 = vpack.c.bf16 %v1227_v46, %v1225_v40 }
 0x3e7   : > { %v1200_v49 = vpop.f32.mrf.mxu0 }
 0x3e8   : > { %1364 = vmatmul.bf16.gmra.mxu3 %v1271_v47 }
 0x3ef   : > { %v1202_v50 = vpop.f32.mrf.mxu0 }
 0x3f0   : > { %v1266_v53 = vpack.c.bf16 %v1202_v50, %v1200_v49 }
 0x3f2   : > { %1339 = vmatmul.bf16.gmra.mxu1 %v1266_v53 }
 0x3f7   : > { %v1205_v54 = vpop.f32.mrf.mxu0 }
 0x3ff   : > { %v1207_v55 = vpop.f32.mrf.mxu0 }
 0x400   : > { %v1267_v56 = vpack.c.bf16 %v1207_v55, %v1205_v54 }
 0x402   : > { %1344 = vmatmul.bf16.gmra.mxu1 %v1267_v56 }
 0x407   : > { %v1210_v61 = vpop.f32.mrf.mxu0 }
 0x40f   : > { %v1212_v12 = vpop.f32.mrf.mxu0 }
 0x410   : > { %v1268_v13 = vpack.c.bf16 %v1212_v12, %v1210_v61 }
 0x412   : > { %1349 = vmatmul.bf16.gmra.mxu1 %v1268_v13 }
 0x417   : > { %v1215_v14 = vpop.f32.mrf.mxu0 }
 0x41f   : > { %v1217_v15 = vpop.f32.mrf.mxu0 }
 0x420   : > { %v1269_v18 = vpack.c.bf16 %v1217_v15, %v1215_v14 }
 0x422   : > { %1354 = vmatmul.bf16.gmra.mxu1 %v1269_v18 }
 0x44f   : > { %v1330_v22 = vpop.f32.mrf.mxu1 }
 0x450   : > { %v1331_v16 = vadd.f32 %v1330_v22, %v1272_v23 }
 0x452   : > { %v1370_v9 = vmax.f32 %v1331_v16, 0.0 }
 0x457   : > { %v1332_v17 = vpop.f32.mrf.mxu1 }
 0x458   : > { %v1333_v2 = vadd.f32 %v1332_v17, %v1272_v23 }
 0x45a   : > { %v1371_v10 = vmax.f32 %v1333_v2, 0.0 }
 0x45b   : > { %v1360_v24 = vpop.f32.mrf.mxu3 }
 0x45c   : > { %v1386_v58 = vpack.c.bf16 %v1371_v10, %v1370_v9  ;;  %v1361_v59 = vadd.f32 %v1360_v24, %v1272_v23 }
 0x45e   : > { %1451 = vmatmul.bf16.vlgmr.msra.gmra.mxu2 %v1386_v58  ;;  %v1382_v51 = vmax.f32 %v1361_v59, 0.0 }
 0x45f   : > { %v1335_v1 = vpop.f32.mrf.mxu1 }
 0x460   : > { %v1336_v52 = vadd.f32 %v1335_v1, %v1272_v23 }
 0x462   : > { %v1372_v48 = vmax.f32 %v1336_v52, 0.0 }
 0x463   : > { %v1362_v25 = vpop.f32.mrf.mxu3 }
 0x464   : > { %v1363_v26 = vadd.f32 %v1362_v25, %v1272_v23 }
 0x466   : > { %v1383_v27 = vmax.f32 %v1363_v26, 0.0 }
 0x467   : > { %v1337_v44 = vpop.f32.mrf.mxu1 }
 0x468   : > { %v1338_v28 = vadd.f32 %v1337_v44, %v1272_v23  ;;  %v1392_v29 = vpack.c.bf16 %v1383_v27, %v1382_v51 }
 0x46a   : > { %v1373_v4 = vmax.f32 %v1338_v28, 0.0  ;;  %1481 = vmatmul.bf16.vlgmr.msra.gmra.mxu3 %v1392_v29 }
 0x46b   : > { %v1365_v0 = vpop.f32.mrf.mxu3 }
 0x46c   : > { %v1387_v42 = vpack.c.bf16 %v1373_v4, %v1372_v48  ;;  %v1366_v43 = vadd.f32 %v1365_v0, %v1272_v23 }
 0x46e   : > { %1456 = vmatmul.bf16.gmra.mxu2 %v1387_v42  ;;  %v1384_v3 = vmax.f32 %v1366_v43, 0.0 }
 0x46f   : > { %v1340_v30 = vpop.f32.mrf.mxu1 }
 0x470   : > { %v1341_v33 = vadd.f32 %v1340_v30, %v1272_v23 }
 0x472   : > { %v1374_v38 = vmax.f32 %v1341_v33, 0.0 }
 0x473   : > { %v1367_v31 = vpop.f32.mrf.mxu3 }
 0x474   : > { %v1368_v32 = vadd.f32 %v1367_v31, %v1272_v23 }
 0x476   : > { %v1385_v34 = vmax.f32 %v1368_v32, 0.0 }
 0x477   : > { %v1342_v35 = vpop.f32.mrf.mxu1 }
 0x478   : > { %v1343_v36 = vadd.f32 %v1342_v35, %v1272_v23  ;;  %v1393_v37 = vpack.c.bf16 %v1385_v34, %v1384_v3 }
 0x47a   : > { %v1375_v39 = vmax.f32 %v1343_v36, 0.0  ;;  %1486 = vmatmul.bf16.gmra.mxu3 %v1393_v37 }
 0x47c   : > { %v1388_v40 = vpack.c.bf16 %v1375_v39, %v1374_v38 }
 0x47e   : > { %1461 = vmatmul.bf16.gmra.mxu2 %v1388_v40 }
 0x47f   : > { %v1345_v41 = vpop.f32.mrf.mxu1 }
 0x480   : > { %v1346_v45 = vadd.f32 %v1345_v41, %v1272_v23 }
 0x482   : > { %v1376_v49 = vmax.f32 %v1346_v45, 0.0 }
 0x487   : > { %v1347_v46 = vpop.f32.mrf.mxu1 }
 0x488   : > { %v1348_v47 = vadd.f32 %v1347_v46, %v1272_v23 }
 0x48a   : > { %v1377_v50 = vmax.f32 %v1348_v47, 0.0 }
 0x48c   : > { %v1389_v53 = vpack.c.bf16 %v1377_v50, %v1376_v49 }
 0x48e   : > { %1466 = vmatmul.bf16.gmra.mxu2 %v1389_v53 }
 0x48f   : > { %v1350_v54 = vpop.f32.mrf.mxu1 }
 0x490   : > { %v1351_v55 = vadd.f32 %v1350_v54, %v1272_v23 }
 0x492   : > { %v1378_v60 = vmax.f32 %v1351_v55, 0.0 }
 0x497   : > { %v1352_v56 = vpop.f32.mrf.mxu1 }
 0x498   : > { %v1353_v57 = vadd.f32 %v1352_v56, %v1272_v23 }
 0x49a   : > { %v1379_v61 = vmax.f32 %v1353_v57, 0.0 }
 0x49c   : > { %v1390_v62 = vpack.c.bf16 %v1379_v61, %v1378_v60 }
 0x49e   : > { %1471 = vmatmul.bf16.gmra.mxu2 %v1390_v62 }
 0x49f   : > { %v1355_v63 = vpop.f32.mrf.mxu1 }
 0x4a0   : > { %v1356_v12 = vadd.f32 %v1355_v63, %v1272_v23 }
 0x4a2   : > { %v1380_v15 = vmax.f32 %v1356_v12, 0.0 }
 0x4a7   : > { %v1357_v13 = vpop.f32.mrf.mxu1 }
 0x4a8   : > { %v1358_v14 = vadd.f32 %v1357_v13, %v1272_v23 }
 0x4aa   : > { %v1381_v18 = vmax.f32 %v1358_v14, 0.0 }
 0x4ac   : > { %v1391_v19 = vpack.c.bf16 %v1381_v18, %v1380_v15 }
 0x4ae   : > { %1476 = vmatmul.bf16.gmra.mxu2 %v1391_v19 }
 0x4e1   : > { %v1452_v21 = vpop.f32.mrf.mxu2 }
 0x4e2   : > { %v1453_v11 = vadd.f32 %v1452_v21, %v1394_v20 }
 0x4e4   : > { %1492 = vst [vmem:[#allocation2 + $0x30] sm:$0xff] %v1453_v11 }
 0x4e9   : > { %v1454_v22 = vpop.f32.mrf.mxu2 }
 0x4ea   : > { %v1455_v16 = vadd.f32 %v1454_v22, %v1394_v20 }
 0x4ec   : > { %1493 = vst [vmem:[#allocation2] sm:$0xff] %v1455_v16 }
 0x4ed   : > { %v1482_v17 = vpop.f32.mrf.mxu3 }
 0x4ee   : > { %v1483_v2 = vadd.f32 %v1482_v17, %v1394_v20 }
 0x4f0   : > { %1504 = vst [vmem:[#allocation2 + $0x60] sm:$0xff] %v1483_v2 }
 0x4f1   : > { %v1457_v9 = vpop.f32.mrf.mxu2 }
 0x4f2   : > { %v1458_v10 = vadd.f32 %v1457_v9, %v1394_v20 }
 0x4f4   : > { %1494 = vst [vmem:[#allocation2 + $0x58] sm:$0xff] %v1458_v10 }
 0x4f5   : > { %v1484_v24 = vpop.f32.mrf.mxu3 }
 0x4f6   : > { %v1485_v23 = vadd.f32 %v1484_v24, %v1394_v20 }
 0x4f8   : > { %1505 = vst [vmem:[#allocation2 + $0x70] sm:$0xff] %v1485_v23 }
 0x4f9   : > { %v1459_v58 = vpop.f32.mrf.mxu2 }
 0x4fa   : > { %v1460_v1 = vadd.f32 %v1459_v58, %v1394_v20 }
 0x4fc   : > { %1495 = vst [vmem:[#allocation2 + $0x18] sm:$0xff] %v1460_v1 }
 0x4fd   : > { %v1487_v59 = vpop.f32.mrf.mxu3 }
 0x4fe   : > { %v1488_v5 = vadd.f32 %v1487_v59, %v1394_v20 }
 0x500   : > { %1506 = vst [vmem:[#allocation2 + $0x78] sm:$0xff] %v1488_v5 }
 0x501   : > { %v1462_v25 = vpop.f32.mrf.mxu2 }
 0x502   : > { %v1463_v51 = vadd.f32 %v1462_v25, %v1394_v20 }
 0x504   : > { %1496 = vst [vmem:[#allocation2 + $0x50] sm:$0xff] %v1463_v51 }
 0x505   : > { %v1489_v26 = vpop.f32.mrf.mxu3 }
 0x506   : > { %v1490_v52 = vadd.f32 %v1489_v26, %v1394_v20 }
 0x508   : > { %1507 = vst [vmem:[#allocation2 + $0x28] sm:$0xff] %v1490_v52 }
 0x509   : > { %v1464_v27 = vpop.f32.mrf.mxu2 }
 0x50a   : > { %v1465_v44 = vadd.f32 %v1464_v27, %v1394_v20 }
 0x50c   : > { %1497 = vst [vmem:[#allocation2 + $0x68] sm:$0xff] %v1465_v44 }
 0x511   : > { %v1467_v28 = vpop.f32.mrf.mxu2 }
 0x512   : > { %v1468_v29 = vadd.f32 %v1467_v28, %v1394_v20 }
 0x514   : > { %1498 = vst [vmem:[#allocation2 + $0x8] sm:$0xff] %v1468_v29 }
 0x519   : > { %v1469_v48 = vpop.f32.mrf.mxu2 }
 0x51a   : > { %v1470_v4 = vadd.f32 %v1469_v48, %v1394_v20 }
 0x51c   : > { %1499 = vst [vmem:[#allocation2 + $0x48] sm:$0xff] %v1470_v4 }
 0x521   : > { %v1472_v0 = vpop.f32.mrf.mxu2 }
 0x522   : > { %v1473_v42 = vadd.f32 %v1472_v0, %v1394_v20 }
 0x524   : > { %1500 = vst [vmem:[#allocation2 + $0x40] sm:$0xff] %v1473_v42 }
 0x529   : > { %v1474_v30 = vpop.f32.mrf.mxu2 }
 0x52a   : > { %v1475_v43 = vadd.f32 %v1474_v30, %v1394_v20 }
 0x52c   : > { %1501 = vst [vmem:[#allocation2 + $0x20] sm:$0xff] %v1475_v43 }
 0x531   : > { %v1477_v31 = vpop.f32.mrf.mxu2 }
 0x532   : > { %v1478_v3 = vadd.f32 %v1477_v31, %v1394_v20 }
 0x534   : > { %1502 = vst [vmem:[#allocation2 + $0x10] sm:$0xff] %v1478_v3 }
 0x539   : > { %v1479_v32 = vpop.f32.mrf.mxu2 }
 0x53a   : > { %v1480_v33 = vadd.f32 %v1479_v32, %v1394_v20 }
 0x53c   : > { %1503 = vst [vmem:[#allocation2 + $0x38] sm:$0xff] %v1480_v33 }
 0x53d PF: > { %p2167_p10 = scmp.ne.s32.totalorder %s2798_s28, 2 }
 0x53f   : > { %1511 = sbr.rel (%p2167_p10) target bundleno = 2103 (0x837), region = 96 }
 0x544   : > { %v3002_v34 = vld [vmem:[#allocation2 + $0x78] sm:$0xff]  ;;  %v3004_v35 = vld [vmem:[#allocation2 + $0x28] sm:$0xff]  ;;  %v3006_v36 = vld [vmem:[#allocation2 + $0x60] sm:$0xff] }
 0x545   : > { %v1558_v37 = vpack.c.bf16 %v3004_v35, %v3002_v34  ;;  %v1542_v38 = vmul.f32 %v3002_v34, %v3002_v34  ;;  %v1543_v39 = vmul.f32 %v3004_v35, %v3004_v35  ;;  %v3014_v40 = vld [vmem:[#allocation2 + $0x70] sm:$0xff]  ;;  %v1540_v41 = vmul.f32 %v3006_v36, %v3006_v36  ;;  %v3022_v47 = vld [vmem:[#allocation2 + $0x38] sm:$0xff]  ;;  %v3030_v56 = vld [vmem:[#allocation2 + $0x40] sm:$0xff] }
 0x546   : > { %v1541_v45 = vmul.f32 %v3014_v40, %v3014_v40  ;;  %v3020_v46 = vld [vmem:[#allocation2 + $0x10] sm:$0xff]  ;;  %v1556_v50 = vpack.c.bf16 %v3014_v40, %v3006_v36  ;;  %v1539_v55 = vmul.f32 %v3022_v47, %v3022_v47  ;;  %v3032_v57 = vld [vmem:[#allocation2 + $0x20] sm:$0xff]  ;;  %v1536_v62 = vmul.f32 %v3030_v56, %v3030_v56  ;;  %v3040_v12 = vld [vmem:[#allocation2 + $0x8] sm:$0xff] }
 0x547   : > { %1561 = vmatpush.bf16.msra.mxu0 %v1558_v37  ;;  %v1559_v49 = vpack.c.bf16 %v1543_v39, %v1542_v38  ;;  %v1538_v54 = vmul.f32 %v3020_v46, %v3020_v46  ;;  %v1554_v60 = vpack.c.bf16 %v3022_v47, %v3020_v46  ;;  %v1537_v63 = vmul.f32 %v3032_v57, %v3032_v57  ;;  %v3042_v13 = vld [vmem:[#allocation2 + $0x48] sm:$0xff]  ;;  %v3050_v20 = vld [vmem:[#allocation2 + $0x50] sm:$0xff]  ;;  %v3060_v2 = vld [vmem:[#allocation2 + $0x58] sm:$0xff] }
 0x548   : > { %v1557_v53 = vpack.c.bf16 %v1541_v45, %v1540_v41  ;;  %v1552_v14 = vpack.c.bf16 %v3032_v57, %v3030_v56  ;;  %v1534_v18 = vmul.f32 %v3040_v12, %v3040_v12  ;;  %v1535_v19 = vmul.f32 %v3042_v13, %v3042_v13  ;;  %v3052_v21 = vld [vmem:[#allocation2 + $0x68] sm:$0xff]  ;;  %v3062_v9 = vld [vmem:[#allocation2 + $0x18] sm:$0xff]  ;;  %v3070_v1 = vld [vmem:[#allocation2 + $0x30] sm:$0xff] }
 0x549   : > { %1574 = vmatpush.bf16.msra.mxu1 %v1559_v49  ;;  %v1555_v61 = vpack.c.bf16 %v1539_v55, %v1538_v54  ;;  %v1553_v15 = vpack.c.bf16 %v1537_v63, %v1536_v62  ;;  %v1550_v11 = vpack.c.bf16 %v3042_v13, %v3040_v12  ;;  %v1532_v16 = vmul.f32 %v3050_v20, %v3050_v20  ;;  %v3072_v59 = vld [vmem:[#allocation2] sm:$0xff] }
 0x54a   : > { %v1551_v22 = vpack.c.bf16 %v1535_v19, %v1534_v18  ;;  %v1533_v17 = vmul.f32 %v3052_v21, %v3052_v21  ;;  %v1548_v10 = vpack.c.bf16 %v3052_v21, %v3050_v20  ;;  %v1530_v23 = vmul.f32 %v3060_v2, %v3060_v2  ;;  %v1560_v44 = vld [vmem:[%s3168_s3] sm:$0x1] }
 0x54b   : > { %1562 = vmatpush.bf16.msra.mxu0 %v1556_v50  ;;  %v1531_v58 = vmul.f32 %v3062_v9, %v3062_v9  ;;  %v1546_v5 = vpack.c.bf16 %v3062_v9, %v3060_v2  ;;  %v1528_v51 = vmul.f32 %v3070_v1, %v3070_v1  ;;  %v1529_v26 = vmul.f32 %v3072_v59, %v3072_v59 }
 0x54c   : > { %v1549_v24 = vpack.c.bf16 %v1533_v17, %v1532_v16  ;;  %v1544_v52 = vpack.c.bf16 %v3072_v59, %v3070_v1  ;;  %v3091_v54 = vperm.slane %v2897_v7, 0 }
 0x54d   : > { %1575 = vmatpush.bf16.msra.mxu1 %v1557_v53  ;;  %v1547_v25 = vpack.c.bf16 %v1531_v58, %v1530_v23  ;;  %v1545_v27 = vpack.c.bf16 %v1529_v26, %v1528_v51  ;;  %v2275_v51 = vld [vmem:[#allocation13 + $0x38] sm:$0xff] }
 0x54e   : > { %1759 = vmatpush.bf16.msra.mxu3 %v2275_v51 }
 0x54f   : > { %1563 = vmatpush.bf16.msra.mxu0 %v1554_v60 }
 0x551   : > { %1576 = vmatpush.bf16.msra.mxu1 %v1555_v61 }
 0x553   : > { %1564 = vmatpush.bf16.msra.mxu0 %v1552_v14 }
 0x555   : > { %1577 = vmatpush.bf16.msra.mxu1 %v1553_v15 }
 0x557   : > { %1565 = vmatpush.bf16.msra.mxu0 %v1550_v11 }
 0x559   : > { %1578 = vmatpush.bf16.msra.mxu1 %v1551_v22 }
 0x55b   : > { %1566 = vmatpush.bf16.msra.mxu0 %v1548_v10 }
 0x55d   : > { %1579 = vmatpush.bf16.msra.mxu1 %v1549_v24 }
 0x55f   : > { %1567 = vmatpush.bf16.msra.mxu0 %v1546_v5 }
 0x561   : > { %1580 = vmatpush.bf16.msra.mxu1 %v1547_v25 }
 0x563   : > { %1568 = vmatpush.bf16.msra.mxu0 %v1544_v52 }
 0x565   : > { %1581 = vmatpush.bf16.msra.mxu1 %v1545_v27 }
 0x566   : > { %1569 = vmatmul.bf16.vlgmr.msra.gmra.mxu0 %v1560_v44 }
 0x568   : > { %1582 = vmatmul.bf16.vlgmr.msra.gmra.mxu1 %v1560_v44 }
 0x5e3   : > { %v1570_v28 = vpop.f32.mrf.mxu0 }
 0x5e4   : > { %v1587_v29 = vmul.f32 0.0625, %v1570_v28  ;;  %v2274_v28 = vld [vmem:[#allocation13 + $0x30] sm:$0xff] }
 0x5e5   : > { %v1583_v48 = vpop.f32.mrf.mxu1  ;;  %1760 = vmatpush.bf16.msra.mxu3 %v2274_v28 }
 0x5e6   : > { %v1589_v4 = vmul.f32 %v1587_v29, %v1587_v29  ;;  %v1588_v0 = vmul.f32 0.0625, %v1583_v48  ;;  %v3085_v41 = vperm.slane %v1587_v29, 0 }
 0x5e8   : > { %v1590_v42 = vsub.f32 %v1588_v0, %v1589_v4  ;;  %v1618_v53 = vsub.f32 %v3002_v34, %v3085_v41  ;;  %v1619_v60 = vsub.f32 %v3004_v35, %v3085_v41  ;;  %v1616_v61 = vsub.f32 %v3006_v36, %v3085_v41 }
 0x5e9   : > { %v1617_v62 = vsub.f32 %v3014_v40, %v3085_v41  ;;  %v1615_v34 = vsub.f32 %v3022_v47, %v3085_v41  ;;  %v1612_v19 = vsub.f32 %v3030_v56, %v3085_v41  ;;  %v1613_v11 = vsub.f32 %v3032_v57, %v3085_v41 }
 0x5ea   : > { %v1591_v30 = vmax.f32 %v1590_v42, 0.0  ;;  %v1610_v56 = vsub.f32 %v3040_v12, %v3085_v41  ;;  %v1611_v57 = vsub.f32 %v3042_v13, %v3085_v41  ;;  %v1608_v12 = vsub.f32 %v3050_v20, %v3085_v41 }
 0x5eb   : > { %v1572_v43 = vpop.f32.mrf.mxu0  ;;  %v1609_v13 = vsub.f32 %v3052_v21, %v3085_v41  ;;  %v1607_v20 = vsub.f32 %v3062_v9, %v3085_v41  ;;  %v1605_v9 = vsub.f32 %v3072_v59, %v3085_v41 }
 0x5ec   : > { %v1592_v31 = vadd.f32 1e-05, %v1591_v30  ;;  %v2273_v43 = vld [vmem:[#allocation13 + $0x28] sm:$0xff] }
 0x5ed   : > { %v1585_v3 = vpop.f32.mrf.mxu1  ;;  %1761 = vmatpush.bf16.msra.mxu3 %v2273_v43 }
 0x5ee   : > { %2463 = vrsqrt.f32 %v1592_v31  ;;  %vm1599_vm4 = vweird.f32 %v1592_v31 }
 0x5f4   : > { %v2464_v32 = vpop.eup %2463 }
 0x5f5   : > { %v1594_v33 = vmul.f32 %v2464_v32, %v1592_v31  ;;  %vm1600_vm3 = vweird.f32 %v2464_v32 }
 0x5f6   : > { %vm1601_vm5 = vmor %vm1599_vm4, %vm1600_vm3 }
 0x5f7   : > { %v1595_v37 = vmul.f32 %v2464_v32, %v1594_v33 }
 0x5f9   : > { %v1596_v38 = vmul.f32 0.5, %v1595_v37  ;;  %v1606_v37 = vsub.f32 %v3060_v2, %v3085_v41  ;;  %v1604_v2 = vsub.f32 %v3070_v1, %v3085_v41 }
 0x5fb   : > { %v1597_v39 = vsub.f32 1.5, %v1596_v38 }
 0x5fd   : > { %v1598_v45 = vmul.f32 %v2464_v32, %v1597_v39 }
 0x5ff   : > { %v1602_v49 = vsel %vm1601_vm5, %v2464_v32, %v1598_v45  ;;  %v2272_v45 = vld [vmem:[#allocation13 + $0x20] sm:$0xff] }
 0x600   : > { %v1620_v50 = vmul.f32 %v1602_v49, %v2895_v6  ;;  %v1614_v6 = vsub.f32 %v3020_v46, %v3085_v41  ;;  %1762 = vmatpush.bf16.msra.mxu3 %v2272_v45 }
 0x602   : > { %v3093_v55 = vperm.slane %v1620_v50, 0 }
 0x604   : > { %v1636_v7 = vmul.f32 %v3093_v55, %v1618_v53  ;;  %v1637_v63 = vmul.f32 %v3093_v55, %v1619_v60  ;;  %v1634_v14 = vmul.f32 %v3093_v55, %v1616_v61  ;;  %v1635_v35 = vmul.f32 %v3093_v55, %v1617_v62 }
 0x605   : > { %v1632_v15 = vmul.f32 %v3093_v55, %v1614_v6  ;;  %v1633_v36 = vmul.f32 %v3093_v55, %v1615_v34  ;;  %v1630_v24 = vmul.f32 %v3093_v55, %v1612_v19  ;;  %v1631_v23 = vmul.f32 %v3093_v55, %v1613_v11  ;;  %v2271_v34 = vld [vmem:[#allocation13 + $0x18] sm:$0xff] }
 0x606   : > { %v1653_v40 = vadd.f32 %v3091_v54, %v1636_v7  ;;  %v1654_v18 = vadd.f32 %v3091_v54, %v1637_v63  ;;  %v1651_v46 = vadd.f32 %v3091_v54, %v1634_v14  ;;  %v1652_v47 = vadd.f32 %v3091_v54, %v1635_v35  ;;  %1763 = vmatpush.bf16.msra.mxu3 %v2271_v34  ;;  %v1671_v11 = vld [vmem:[#allocation9] sm:$0xf] }
 0x607   : > { %v1649_v17 = vadd.f32 %v3091_v54, %v1632_v15  ;;  %v1650_v10 = vadd.f32 %v3091_v54, %v1633_v36  ;;  %v1647_v27 = vadd.f32 %v3091_v54, %v1630_v24  ;;  %v1648_v44 = vadd.f32 %v3091_v54, %v1631_v23  ;;  %v2270_v15 = vld [vmem:[#allocation13 + $0x10] sm:$0xff] }
 0x608   : > { %v1669_v22 = vmax.f32 %v1653_v40, 0.0  ;;  %v1670_v16 = vmax.f32 %v1654_v18, 0.0  ;;  %v1667_v5 = vmax.f32 %v1651_v46, 0.0  ;;  %v1668_v25 = vmax.f32 %v1652_v47, 0.0 }
 0x609   : > { %v1665_v26 = vmax.f32 %v1649_v17, 0.0  ;;  %v1666_v52 = vmax.f32 %v1650_v10, 0.0  ;;  %v1628_v48 = vmul.f32 %v3093_v55, %v1610_v56  ;;  %v1629_v4 = vmul.f32 %v3093_v55, %v1611_v57 }
 0x60a   : > { %v1679_v58 = vpack.c.bf16 %v1670_v16, %v1669_v22  ;;  %v1678_v29 = vpack.c.bf16 %v1668_v25, %v1667_v5  ;;  %v1663_v42 = vmax.f32 %v1647_v27, 0.0  ;;  %v1664_v30 = vmax.f32 %v1648_v44, 0.0  ;;  %1764 = vmatpush.bf16.msra.mxu3 %v2270_v15  ;;  %v2268_v22 = vld [vmem:[#allocation13] sm:$0xff] }
 0x60b   : > { %v1677_v0 = vpack.c.bf16 %v1666_v52, %v1665_v26  ;;  %v1645_v31 = vadd.f32 %v3091_v54, %v1628_v48  ;;  %v1646_v3 = vadd.f32 %v3091_v54, %v1629_v4  ;;  %v1626_v32 = vmul.f32 %v3093_v55, %v1608_v12 }
 0x60c   : > { %1680 = vmatpush.bf16.msra.mxu2 %v1679_v58  ;;  %v1627_v33 = vmul.f32 %v3093_v55, %v1609_v13  ;;  %v1676_v21 = vpack.c.bf16 %v1664_v30, %v1663_v42  ;;  %v1624_v38 = vmul.f32 %v3093_v55, %v1606_v37  ;;  %v1625_v39 = vmul.f32 %v3093_v55, %v1607_v20 }
 0x60d   : > { %v1661_v49 = vmax.f32 %v1645_v31, 0.0  ;;  %v1662_v50 = vmax.f32 %v1646_v3, 0.0  ;;  %v1643_v53 = vadd.f32 %v3091_v54, %v1626_v32  ;;  %v1622_v62 = vmul.f32 %v3093_v55, %v1604_v2 }
 0x60e   : > { %v1644_v60 = vadd.f32 %v3091_v54, %v1627_v33  ;;  %v1641_v61 = vadd.f32 %v3091_v54, %v1624_v38  ;;  %v1623_v6 = vmul.f32 %v3093_v55, %v1605_v9  ;;  %v1642_v35 = vadd.f32 %v3091_v54, %v1625_v39  ;;  %v2269_v55 = vld [vmem:[#allocation13 + $0x8] sm:$0xff] }
 0x60f   : > { %v1675_v7 = vpack.c.bf16 %v1662_v50, %v1661_v49  ;;  %v1659_v63 = vmax.f32 %v1643_v53, 0.0  ;;  %v1639_v1 = vadd.f32 %v3091_v54, %v1622_v62  ;;  %1765 = vmatpush.bf16.msra.mxu3 %v2269_v55  ;;  %v1772_v24 = vlaneseq }
 0x610   : > { %1681 = vmatpush.bf16.msra.mxu2 %v1678_v29  ;;  %v1660_v14 = vmax.f32 %v1644_v60, 0.0  ;;  %v1657_v41 = vmax.f32 %v1641_v61, 0.0  ;;  %v1658_v36 = vmax.f32 %v1642_v35, 0.0  ;;  %v1640_v40 = vadd.f32 %v3091_v54, %v1623_v6 }
 0x611   : > { %v1655_v46 = vmax.f32 %v1639_v1, 0.0  ;;  %v1773_v54 = vand.u32 127, %v1772_v24  ;;  %v1710_v23 = vperm.slane %v2899_v8, 0 }
 0x612   : > { %v1674_v59 = vpack.c.bf16 %v1660_v14, %v1659_v63  ;;  %v1673_v18 = vpack.c.bf16 %v1658_v36, %v1657_v41  ;;  %v1656_v47 = vmax.f32 %v1640_v40, 0.0 }
 0x613   : > { %1766 = vmatpush.bf16.msra.mxu3 %v2268_v22  ;;  %vm1774_vm6 = vcmp.lt.s32.totalorder %v1773_v54, 4 }
 0x614   : > { %1682 = vmatpush.bf16.msra.mxu2 %v1677_v0  ;;  %v1672_v19 = vpack.c.bf16 %v1656_v47, %v1655_v46 }
 0x618   : > { %1683 = vmatpush.bf16.msra.mxu2 %v1676_v21 }
 0x61c   : > { %1684 = vmatpush.bf16.msra.mxu2 %v1675_v7 }
 0x620   : > { %1685 = vmatpush.bf16.msra.mxu2 %v1674_v59 }
 0x624   : > { %1686 = vmatpush.bf16.msra.mxu2 %v1673_v18 }
 0x628   : > { %1687 = vmatpush.bf16.msra.mxu2 %v1672_v19 }
 0x62b   : > { %1688 = vmatmul.bf16.vlgmr.msra.gmra.mxu2 %v1671_v11 }
 0x6ae   : > { %v1689_v16 = vpop.f32.mrf.mxu2 }
 0x6af   : > { %v1693_v17 = vpack.c.bf16 %v1689_v16, %v1689_v16 }
 0x6b1   : > { %1767 = vmatmul.bf16.vlgmr.msra.gmra.mxu3 %v1693_v17 }
 0x6b6   : > { %v1691_v10 = vpop.f32.mrf.mxu2 }
 0x734   : > { %v1768_v58 = vpop.f32.mrf.mxu3 }
 0x735   : > { %v1769_v5 = vadd.f32 %v1768_v58, %v1710_v23 }
 0x737   : > { %v1775_v25 = vsel %vm1774_vm6, %v1769_v5, -1e+30 }
 0x738   : > { %1776 = vmax.xlane.f32.xlu0 %v1775_v25 }
 0x73c   : > { %v1770_v51 = vpop.f32.mrf.mxu3 }
 0x7ab   : > { %v1777_v56 = vpop.xlane.xlu0 %1776 }
 0x7ac   : > { %v1778_v57 = vsub.f32 %v1775_v25, %v1777_v56 }
 0x7ae   : > { %v1779_v26 = vmul.f32 1.442695, %v1778_v57 }
 0x7b0   : > { %2465 = vpow2.f32 %v1779_v26 }
 0x7b6   : > { %v2466_v52 = vpop.eup %2465 }
 0x7b7   : > { %1781 = vadd.xlane.f32.xlu0 %v2466_v52 }
 0x82a   : > { %v1782_v27 = vpop.xlane.xlu0 %1781 }
 0x82b   : > { %2467 = vlog2.f32 %v1782_v27 }
 0x831   : > { %v2468_v44 = vpop.eup %2467 }
 0x832   : > { %v1784_v28 = vmul.f32 0.6931472, %v2468_v44 }
 0x834   : > { %v1785_v29 = vsub.f32 %v1778_v57, %v1784_v28 }
 0x836   : > { %1786 = vst [vmem:[#allocation16] sm:$0xff] %v1785_v29 }
 0x837 PF: > { %p2439_p11 = scmp.eq.s32.totalorder %s2798_s28, 2  ;;  %s2746_s12 = smov [#allocation16]  }
 0x838   : > { %s1793_s14 = sshll.u32 %s2746_s12, 4  ;;  %s1795_s18 = sshll.u32 %s3173_s8, 4  ;;  %s1794_s14 = int_to_ptr.vmem [resolvable:$true] %s1793_s14  ;;  %s1796_s18 = int_to_ptr.hbm [resolvable:$true] %s1795_s18 }
 0x839   : > { %2400 = dma.vmem_to_hbm [thread:$0]  (%p2439_p11), %s1794_s14, 128, %s1796_s18, [#allocation6]  }
 0x83a   : > { %2728 = dma.done.wait (%p2439_p11), [#allocation6], 128  }
 0x83b   : > { %2730 = vsyncadd (%p2439_p11), [#allocation6], 4294967168 }
 0x83c PF: > { %s23_s27 = sadd.s32 1, %s2733_s27  }
 0x83d   : > { %p20_p12 = scmp.ge.s32.totalorder %s23_s27, 5  }
 0x83f   :  { %22 = sbr.rel (!%p20_p12) target bundleno = 5 (0x5), region = 123 }
 0x844   :  { %1809 = vsyncpa [#allocation5], 1 }
 0x845   :  { %1811 = vsyncpa [#allocation5 + $0x1], 1 }
 0x846   :  { %1812 = vsyncpa [#allocation8], 1 }
 0x847   :  { %1813 = vsyncpa [#allocation11], 1 }
 0x848   :  { %1814 = vsyncpa [#allocation14], 1 }
 0x849   :  { %1815 = vsyncpa [#allocation6], 1 }
 0x84a   :  { %1817 = vsyncpa [#allocation6 + $0x1], 1 }

</bundles_post_ra>
